<compile_context>
chip_gen: v5e
topology: v5e:2x2
jax: 0.10.0
libtpu: 0.0.40
codegen_flags: <defaults>
</compile_context>

<pallas_src>
import math

import jax
import jax.numpy as jnp
from jax.experimental import pallas as pl
from jax.experimental.pallas import tpu as pltpu


# ---------------------------------------------------------------------------
# Kernel
# ---------------------------------------------------------------------------
def _make_mlp_kernel(d_out, mxu_dtype):
    """Build the fused forward kernel for one batch tile.

    Weights (lane-padded to multiples of 128) live in VMEM for the whole grid;
    matmuls run on the MXU in `mxu_dtype` with f32 accumulation; bias/ReLU and
    the sigmoid stay in f32 (v5e-friendly).  Only the real `d_out` columns of
    the final logits get the exp + divide and are stored.
    """

    def kernel(x_ref,
               w1_ref, b1_ref,
               w2_ref, b2_ref,
               w3_ref, b3_ref,
               w4_ref, b4_ref,
               o_ref):
        # In-kernel cast of the (tiny) input tile; hidden under the first matmul.
        x = x_ref[...].astype(mxu_dtype)

        h = jnp.dot(x, w1_ref[...], preferred_element_type=jnp.float32) + b1_ref[...]
        h = jnp.maximum(h, 0.0)                                   # ReLU, f32, 128 lanes

        h = jnp.dot(h.astype(mxu_dtype), w2_ref[...],
                    preferred_element_type=jnp.float32) + b2_ref[...]
        h = jnp.maximum(h, 0.0)

        h = jnp.dot(h.astype(mxu_dtype), w3_ref[...],
                    preferred_element_type=jnp.float32) + b3_ref[...]
        h = jnp.maximum(h, 0.0)

        logits = jnp.dot(h.astype(mxu_dtype), w4_ref[...],
                         preferred_element_type=jnp.float32) + b4_ref[...]

        # Exact sigmoid on the real output columns only (static slice).
        lr = logits[:, :d_out]
        o_ref[...] = (1.0 / (1.0 + jnp.exp(-lr))).astype(o_ref.dtype)

    return kernel


# ---------------------------------------------------------------------------
# One-time parameter packing (padding + MXU-dtype cast) — NOT per forward call
# ---------------------------------------------------------------------------
def _round_up(n, m=128):
    return ((n + m - 1) // m) * m


def _pad_to(arr, rows, cols):
    r, c = arr.shape
    return jnp.pad(arr, ((0, rows - r), (0, cols - c)))


def pack_params(params, *, use_bf16_matmul=True):
    """Pad hidden/output widths to multiples of 128 lanes and cast weights to
    the MXU dtype.  Zero padding is exact (padded activations are relu(0)=0,
    padded weight rows are 0).  Call this ONCE, outside the forward."""
    mxu_dtype = jnp.bfloat16 if use_bf16_matmul else jnp.float32
    w1, w2, w3, w4 = params["w1"], params["w2"], params["w3"], params["w4"]
    b1, b2, b3, b4 = params["b1"], params["b2"], params["b3"], params["b4"]

    D_in = w1.shape[0]
    h1, h2, h3, D_out = w1.shape[1], w2.shape[1], w3.shape[1], w4.shape[1]
    p1, p2, p3, p_out = (_round_up(n) for n in (h1, h2, h3, D_out))

    packed = (
        _pad_to(w1, D_in, p1).astype(mxu_dtype),
        _pad_to(b1, 1, p1).astype(jnp.float32),
        _pad_to(w2, p1, p2).astype(mxu_dtype),
        _pad_to(b2, 1, p2).astype(jnp.float32),
        _pad_to(w3, p2, p3).astype(mxu_dtype),
        _pad_to(b3, 1, p3).astype(jnp.float32),
        _pad_to(w4, p3, p_out).astype(mxu_dtype),
        _pad_to(b4, 1, p_out).astype(jnp.float32),
    )
    meta = dict(D_in=D_in, D_out=D_out, padded=(p1, p2, p3, p_out),
                mxu_dtype=mxu_dtype)
    return packed, meta


# ---------------------------------------------------------------------------
# Wrapper
# ---------------------------------------------------------------------------
def _replicated_spec(arr):
    """Whole-array block, same block index for every grid step (DMA'd once)."""
    nd = arr.ndim
    return pl.BlockSpec(arr.shape, lambda i: (0,) * nd)


def _default_batch_tile(B):
    # Modest batches: a single grid step (best on single-TC v5e/v6e — the MXU
    # gets the full M, and we skip per-step overhead).  Large batches: <=512
    # row tiles, giving >=2 "parallel" steps that megacore can shard across
    # v7x's two TensorCores while keeping per-tile activations bounded in VMEM.
    if B <= 512:
        return B
    for tb in (512, 256, 128, 64, 32, 16, 8, 4, 2, 1):
        if B % tb == 0:
            return tb
    return B


def discriminator_forward(y, packed, meta, *, batch_tile=None):
    """Fused discriminator MLP via one pallas_call.

    y:      (B, D_in) float32
    packed: output of pack_params() — pre-padded / pre-cast weights & biases
    """
    B, D_in = y.shape
    assert D_in == meta["D_in"], "input width mismatch"
    D_out = meta["D_out"]
    p1, p2, p3, p_out = meta["padded"]
    mxu_dtype = meta["mxu_dtype"]

    tb = batch_tile if batch_tile is not None else _default_batch_tile(B)
    assert B % tb == 0, "batch must be divisible by the batch tile"
    grid = (B // tb,)

    in_specs = [pl.BlockSpec((tb, D_in), lambda i: (i, 0))]      # x tile (f32)
    in_specs += [_replicated_spec(p) for p in packed]            # weights/biases

    # Advisory cost hint so XLA schedules the tiny kernel sensibly.
    itemsize = jnp.dtype(mxu_dtype).itemsize
    flops = 2 * B * (D_in * p1 + p1 * p2 + p2 * p3 + p3 * p_out)
    bytes_accessed = (
        B * D_in * 4
        + (D_in * p1 + p1 * p2 + p2 * p3 + p3 * p_out) * itemsize
        + (p1 + p2 + p3 + p_out) * 4
        + B * D_out * 4
    )
    cost = pl.CostEstimate(flops=int(flops),
                           transcendentals=int(B * D_out),
                           bytes_accessed=int(bytes_accessed))

    return pl.pallas_call(
        _make_mlp_kernel(D_out, mxu_dtype),
        out_shape=jax.ShapeDtypeStruct((B, D_out), jnp.float32),
        grid=grid,
        in_specs=in_specs,
        out_specs=pl.BlockSpec((tb, D_out), lambda i: (i, 0)),   # narrow direct store
        compiler_params=pltpu.CompilerParams(
            dimension_semantics=("parallel",)),
        cost_estimate=cost,
    )(y, *packed)


# ---------------------------------------------------------------------------
# Init + references
# ---------------------------------------------------------------------------
def init_params(key, D_in, D_out, w1, w2, w3):
    """Deterministic init mirroring the PyTorch module:
    weights xavier_uniform_, biases PyTorch Linear default U(-1/sqrt(in), 1/sqrt(in)).
    Weights are stored pre-transposed as (in, out)."""
    dims = [(D_in, w1), (w1, w2), (w2, w3), (w3, D_out)]
    params = {}
    keys = jax.random.split(key, 2 * len(dims))
    for idx, (fan_in, fan_out) in enumerate(dims):
        kw, kb = keys[2 * idx], keys[2 * idx + 1]
        gain = math.sqrt(6.0 / (fan_in + fan_out))        # xavier uniform bound
        W = jax.random.uniform(kw, (fan_in, fan_out), jnp.float32, -gain, gain)
        bb = 1.0 / math.sqrt(fan_in)
        b = jax.random.uniform(kb, (1, fan_out), jnp.float32, -bb, bb)
        params[f"w{idx + 1}"] = W
        params[f"b{idx + 1}"] = b
    return params


def reference_forward(y, params):
    """Pure-f32 JAX reference (module semantics)."""
    h = jax.nn.relu(y @ params["w1"] + params["b1"])
    h = jax.nn.relu(h @ params["w2"] + params["b2"])
    h = jax.nn.relu(h @ params["w3"] + params["b3"])
    return jax.nn.sigmoid(h @ params["w4"] + params["b4"])


def reference_forward_matched(y, params, mxu_dtype=jnp.bfloat16):
    """Reference with the kernel's precision policy (bf16 matmul, f32 acc,
    f32 elementwise, exact sigmoid formula)."""
    def dense(h, w, b):
        return jnp.dot(h.astype(mxu_dtype), w.astype(mxu_dtype),
                       preferred_element_type=jnp.float32) + b
    h = jax.nn.relu(dense(y, params["w1"], params["b1"]))
    h = jax.nn.relu(dense(h, params["w2"], params["b2"]))
    h = jax.nn.relu(dense(h, params["w3"], params["b3"]))
    logits = dense(h, params["w4"], params["b4"])
    return 1.0 / (1.0 + jnp.exp(-logits))


# ---------------------------------------------------------------------------
# Self-test
# ---------------------------------------------------------------------------
if __name__ == "__main__":
    # Shapes consistent with the module's forward: (batch, D_in) input.
    B, D_in, W1, W2, W3, D_out = 256, 32, 64, 64, 32, 8

    key = jax.random.PRNGKey(0)
    k_params, k_x = jax.random.split(key)
    params = init_params(k_params, D_in, D_out, W1, W2, W3)
    x = jax.random.normal(k_x, (B, D_in), jnp.float32)

    packed, meta = pack_params(params)               # one-time prep (hoisted)

    out = discriminator_forward(x, packed, meta)     # B=256 -> single grid step
    out = jax.block_until_ready(out)
    assert out.shape == (B, D_out)

    # Matched-precision reference (same bf16-matmul / f32-elementwise policy).
    ref_matched = reference_forward_matched(x, params)
    assert jnp.allclose(out, ref_matched, atol=2e-3, rtol=2e-3), \
        "mismatch vs matched-precision reference"

    # Looser sanity check vs. the pure-f32 module semantics (bf16 drift only).
    ref_f32 = reference_forward(x, params)
    assert jnp.allclose(out, ref_f32, atol=3e-2, rtol=3e-2), \
        "mismatch vs f32 reference"

    print("KERNEL_OK")
</pallas_src>

<mosaic_0001>
module attributes {stable_mosaic.version = 11 : i64} {
  func.func @kernel(%arg0: i32, %arg1: memref<256x32xf32, #tpu.memory_space<vmem>>, %arg2: memref<32x128xbf16, #tpu.memory_space<vmem>>, %arg3: memref<1x128xf32, #tpu.memory_space<vmem>>, %arg4: memref<128x128xbf16, #tpu.memory_space<vmem>>, %arg5: memref<1x128xf32, #tpu.memory_space<vmem>>, %arg6: memref<128x128xbf16, #tpu.memory_space<vmem>>, %arg7: memref<1x128xf32, #tpu.memory_space<vmem>>, %arg8: memref<128x128xbf16, #tpu.memory_space<vmem>>, %arg9: memref<1x128xf32, #tpu.memory_space<vmem>>, %arg10: memref<256x8xf32, #tpu.memory_space<vmem>>) attributes {dimension_semantics = [#tpu.dimension_semantics<parallel>], iteration_bounds = array<i64: 1>, scalar_prefetch = 0 : i64, scratch_operands = 0 : i64, tpu.core_type = #tpu.core_type<tc>, window_params = [{transform_indices = @transform_0, window_bounds = array<i64: 256, 32>}, {pipeline_mode = #tpu.pipeline_mode<synchronous>, transform_indices = @transform_1, window_bounds = array<i64: 32, 128>}, {pipeline_mode = #tpu.pipeline_mode<synchronous>, transform_indices = @transform_2, window_bounds = array<i64: 1, 128>}, {pipeline_mode = #tpu.pipeline_mode<synchronous>, transform_indices = @transform_3, window_bounds = array<i64: 128, 128>}, {pipeline_mode = #tpu.pipeline_mode<synchronous>, transform_indices = @transform_4, window_bounds = array<i64: 1, 128>}, {pipeline_mode = #tpu.pipeline_mode<synchronous>, transform_indices = @transform_5, window_bounds = array<i64: 128, 128>}, {pipeline_mode = #tpu.pipeline_mode<synchronous>, transform_indices = @transform_6, window_bounds = array<i64: 1, 128>}, {pipeline_mode = #tpu.pipeline_mode<synchronous>, transform_indices = @transform_7, window_bounds = array<i64: 128, 128>}, {pipeline_mode = #tpu.pipeline_mode<synchronous>, transform_indices = @transform_8, window_bounds = array<i64: 1, 128>}, {transform_indices = @transform_9, window_bounds = array<i64: 256, 8>}]} {
    %c0 = arith.constant 0 : index
    %c0_0 = arith.constant 0 : index
    %0 = vector.load %arg1[%c0, %c0_0] : memref<256x32xf32, #tpu.memory_space<vmem>>, vector<256x32xf32>
    %1 = arith.truncf %0 : vector<256x32xf32> to vector<256x32xbf16>
    %c0_1 = arith.constant 0 : index
    %c0_2 = arith.constant 0 : index
    %2 = vector.load %arg2[%c0_1, %c0_2] : memref<32x128xbf16, #tpu.memory_space<vmem>>, vector<32x128xbf16>
    %cst = arith.constant dense<0.000000e+00> : vector<256x128xf32>
    %3 = tpu.matmul %1, %2, %cst {dimension_numbers = #tpu.dot_dimension_numbers<[1], [0], [0], [1], [0, 0, 1, 1], [], []>} : vector<256x32xbf16>, vector<32x128xbf16>, vector<256x128xf32> -> vector<256x128xf32>
    %c0_3 = arith.constant 0 : index
    %c0_4 = arith.constant 0 : index
    %4 = vector.load %arg3[%c0_3, %c0_4] : memref<1x128xf32, #tpu.memory_space<vmem>>, vector<1x128xf32>
    %5 = vector.broadcast %4 : vector<1x128xf32> to vector<256x128xf32>
    %6 = arith.addf %3, %5 : vector<256x128xf32>
    %cst_5 = arith.constant 0.000000e+00 : f32
    %7 = vector.broadcast %cst_5 : f32 to vector<256x128xf32>
    %8 = arith.maximumf %6, %7 : vector<256x128xf32>
    %9 = arith.truncf %8 : vector<256x128xf32> to vector<256x128xbf16>
    %c0_6 = arith.constant 0 : index
    %c0_7 = arith.constant 0 : index
    %10 = vector.load %arg4[%c0_6, %c0_7] : memref<128x128xbf16, #tpu.memory_space<vmem>>, vector<128x128xbf16>
    %cst_8 = arith.constant dense<0.000000e+00> : vector<256x128xf32>
    %11 = tpu.matmul %9, %10, %cst_8 {dimension_numbers = #tpu.dot_dimension_numbers<[1], [0], [0], [1], [0, 0, 1, 1], [], []>} : vector<256x128xbf16>, vector<128x128xbf16>, vector<256x128xf32> -> vector<256x128xf32>
    %c0_9 = arith.constant 0 : index
    %c0_10 = arith.constant 0 : index
    %12 = vector.load %arg5[%c0_9, %c0_10] : memref<1x128xf32, #tpu.memory_space<vmem>>, vector<1x128xf32>
    %13 = vector.broadcast %12 : vector<1x128xf32> to vector<256x128xf32>
    %14 = arith.addf %11, %13 : vector<256x128xf32>
    %cst_11 = arith.constant 0.000000e+00 : f32
    %15 = vector.broadcast %cst_11 : f32 to vector<256x128xf32>
    %16 = arith.maximumf %14, %15 : vector<256x128xf32>
    %17 = arith.truncf %16 : vector<256x128xf32> to vector<256x128xbf16>
    %c0_12 = arith.constant 0 : index
    %c0_13 = arith.constant 0 : index
    %18 = vector.load %arg6[%c0_12, %c0_13] : memref<128x128xbf16, #tpu.memory_space<vmem>>, vector<128x128xbf16>
    %cst_14 = arith.constant dense<0.000000e+00> : vector<256x128xf32>
    %19 = tpu.matmul %17, %18, %cst_14 {dimension_numbers = #tpu.dot_dimension_numbers<[1], [0], [0], [1], [0, 0, 1, 1], [], []>} : vector<256x128xbf16>, vector<128x128xbf16>, vector<256x128xf32> -> vector<256x128xf32>
    %c0_15 = arith.constant 0 : index
    %c0_16 = arith.constant 0 : index
    %20 = vector.load %arg7[%c0_15, %c0_16] : memref<1x128xf32, #tpu.memory_space<vmem>>, vector<1x128xf32>
    %21 = vector.broadcast %20 : vector<1x128xf32> to vector<256x128xf32>
    %22 = arith.addf %19, %21 : vector<256x128xf32>
    %cst_17 = arith.constant 0.000000e+00 : f32
    %23 = vector.broadcast %cst_17 : f32 to vector<256x128xf32>
    %24 = arith.maximumf %22, %23 : vector<256x128xf32>
    %25 = arith.truncf %24 : vector<256x128xf32> to vector<256x128xbf16>
    %c0_18 = arith.constant 0 : index
    %c0_19 = arith.constant 0 : index
    %26 = vector.load %arg8[%c0_18, %c0_19] : memref<128x128xbf16, #tpu.memory_space<vmem>>, vector<128x128xbf16>
    %cst_20 = arith.constant dense<0.000000e+00> : vector<256x128xf32>
    %27 = tpu.matmul %25, %26, %cst_20 {dimension_numbers = #tpu.dot_dimension_numbers<[1], [0], [0], [1], [0, 0, 1, 1], [], []>} : vector<256x128xbf16>, vector<128x128xbf16>, vector<256x128xf32> -> vector<256x128xf32>
    %c0_21 = arith.constant 0 : index
    %c0_22 = arith.constant 0 : index
    %28 = vector.load %arg9[%c0_21, %c0_22] : memref<1x128xf32, #tpu.memory_space<vmem>>, vector<1x128xf32>
    %29 = vector.broadcast %28 : vector<1x128xf32> to vector<256x128xf32>
    %30 = arith.addf %27, %29 : vector<256x128xf32>
    %31 = vector.extract_strided_slice %30 {offsets = [0, 0], sizes = [256, 8], strides = [1, 1]} : vector<256x128xf32> to vector<256x8xf32>
    %cst_23 = arith.constant 0.000000e+00 : f32
    %32 = vector.broadcast %cst_23 : f32 to vector<256x8xf32>
    %33 = arith.subf %32, %31 : vector<256x8xf32>
    %34 = math.exp %33 : vector<256x8xf32>
    %cst_24 = arith.constant 1.000000e+00 : f32
    %35 = vector.broadcast %cst_24 : f32 to vector<256x8xf32>
    %36 = arith.addf %35, %34 : vector<256x8xf32>
    %cst_25 = arith.constant 1.000000e+00 : f32
    %37 = vector.broadcast %cst_25 : f32 to vector<256x8xf32>
    %38 = arith.divf %37, %36 : vector<256x8xf32>
    %c0_26 = arith.constant 0 : index
    %c0_27 = arith.constant 0 : index
    %39 = vector.load %arg10[%c0_26, %c0_27] : memref<256x8xf32, #tpu.memory_space<vmem>>, vector<256x8xf32>
    tpu.vector_store %arg10[%c0_26, %c0_27], %38 {strides = array<i32>} : memref<256x8xf32, #tpu.memory_space<vmem>>, vector<256x8xf32>,
    return
  }
  func.func @transform_0(%arg0: i32) -> (i32, i32) {
    %c0_i32 = arith.constant 0 : i32
    %c0_i32_0 = arith.constant 0 : i32
    return %arg0, %c0_i32 : i32, i32
  }
  func.func @transform_1(%arg0: i32) -> (i32, i32) {
    %c0_i32 = arith.constant 0 : i32
    %c0_i32_0 = arith.constant 0 : i32
    %c0_i32_1 = arith.constant 0 : i32
    return %c0_i32, %c0_i32_0 : i32, i32
  }
  func.func @transform_2(%arg0: i32) -> (i32, i32) {
    %c0_i32 = arith.constant 0 : i32
    %c0_i32_0 = arith.constant 0 : i32
    %c0_i32_1 = arith.constant 0 : i32
    return %c0_i32, %c0_i32_0 : i32, i32
  }
  func.func @transform_3(%arg0: i32) -> (i32, i32) {
    %c0_i32 = arith.constant 0 : i32
    %c0_i32_0 = arith.constant 0 : i32
    %c0_i32_1 = arith.constant 0 : i32
    return %c0_i32, %c0_i32_0 : i32, i32
  }
  func.func @transform_4(%arg0: i32) -> (i32, i32) {
    %c0_i32 = arith.constant 0 : i32
    %c0_i32_0 = arith.constant 0 : i32
    %c0_i32_1 = arith.constant 0 : i32
    return %c0_i32, %c0_i32_0 : i32, i32
  }
  func.func @transform_5(%arg0: i32) -> (i32, i32) {
    %c0_i32 = arith.constant 0 : i32
    %c0_i32_0 = arith.constant 0 : i32
    %c0_i32_1 = arith.constant 0 : i32
    return %c0_i32, %c0_i32_0 : i32, i32
  }
  func.func @transform_6(%arg0: i32) -> (i32, i32) {
    %c0_i32 = arith.constant 0 : i32
    %c0_i32_0 = arith.constant 0 : i32
    %c0_i32_1 = arith.constant 0 : i32
    return %c0_i32, %c0_i32_0 : i32, i32
  }
  func.func @transform_7(%arg0: i32) -> (i32, i32) {
    %c0_i32 = arith.constant 0 : i32
    %c0_i32_0 = arith.constant 0 : i32
    %c0_i32_1 = arith.constant 0 : i32
    return %c0_i32, %c0_i32_0 : i32, i32
  }
  func.func @transform_8(%arg0: i32) -> (i32, i32) {
    %c0_i32 = arith.constant 0 : i32
    %c0_i32_0 = arith.constant 0 : i32
    %c0_i32_1 = arith.constant 0 : i32
    return %c0_i32, %c0_i32_0 : i32, i32
  }
  func.func @transform_9(%arg0: i32) -> (i32, i32) {
    %c0_i32 = arith.constant 0 : i32
    %c0_i32_0 = arith.constant 0 : i32
    return %arg0, %c0_i32 : i32, i32
  }
}

</mosaic_0001>

<bundles_post_ra>
// kernel: tpu_custom_call.1
= control target key start
LH: loop header
LB: loop body
LE: loop exit
PB: predicated region body
PF: predicated region fallthrough
CT: control target
= control target key end

     0   :  { %vm101_vm0 = vcmask 261120   ;;  %vm1462_vm4 = vcmask 64512   ;;  %s2299_s1 = inlined_call_operand.vmem [shape: bf16[32,128], index: 1, kind: input, shape index: {}]   ;;  %s2300_s0 = inlined_call_operand.vmem [shape: f32[256,32], index: 0, kind: input, shape index: {}]   ;;  %s2301_s2 = inlined_call_operand.vmem [shape: f32[1,128], index: 2, kind: input, shape index: {}]   ;;  %s2302_s3 = inlined_call_operand.vmem [shape: bf16[128,128], index: 3, kind: input, shape index: {}]   ;;  %s2303_s4 = inlined_call_operand.vmem [shape: f32[1,128], index: 4, kind: input, shape index: {}]   ;;  %s2304_s5 = inlined_call_operand.vmem [shape: bf16[128,128], index: 5, kind: input, shape index: {}]   ;;  %s2305_s6 = inlined_call_operand.vmem [shape: f32[1,128], index: 6, kind: input, shape index: {}]   ;;  %s2306_s7 = inlined_call_operand.vmem [shape: bf16[128,128], index: 7, kind: input, shape index: {}]   ;;  %s2307_s8 = inlined_call_operand.vmem [shape: f32[1,128], index: 8, kind: input, shape index: {}]   ;;  %s2308_s9 = inlined_call_operand.vmem [shape: f32[256,8], index: 9, kind: output, shape index: {}]  }
   0x1   :  { %v1620_v0 = vld [vmem:[%s2299_s1 + $0x8] sm:$0xff]  ;;  %v1619_v1 = vld [vmem:[%s2299_s1] sm:$0xff]  ;;  %v35_v5 = vld [vmem:[%s2300_s0 + $0x10] sm:$0xff] }
   0x2   :  { %156 = vmatpush.bf16.msra.mxu0 %v1620_v0  ;;  %v33_v2 = vld [vmem:[%s2300_s0] sm:$0xff]  ;;  %v34_v3 = vld [vmem:[%s2300_s0 + $0x8] sm:$0xff]  ;;  %v36_v6 = vld [vmem:[%s2300_s0 + $0x18] sm:$0xff] }
   0x3   :  { %v65_v4 = vpack.c.bf16 %v34_v3, %v33_v2  ;;  %v66_v7 = vpack.c.bf16 %v36_v6, %v35_v5  ;;  %v37_v8 = vld [vmem:[%s2300_s0 + $0x20] sm:$0xff]  ;;  %v38_v9 = vld [vmem:[%s2300_s0 + $0x28] sm:$0xff]  ;;  %v39_v11 = vld [vmem:[%s2300_s0 + $0x30] sm:$0xff] }
   0x4   :  { %v67_v10 = vpack.c.bf16 %v38_v9, %v37_v8  ;;  %v40_v12 = vld [vmem:[%s2300_s0 + $0x38] sm:$0xff]  ;;  %v41_v14 = vld [vmem:[%s2300_s0 + $0x40] sm:$0xff]  ;;  %v42_v15 = vld [vmem:[%s2300_s0 + $0x48] sm:$0xff] }
   0x5   :  { %v68_v13 = vpack.c.bf16 %v40_v12, %v39_v11  ;;  %v69_v16 = vpack.c.bf16 %v42_v15, %v41_v14  ;;  %v1628_v17 = vld [vmem:[%s2302_s3 + $0x38] sm:$0xff]  ;;  %v43_v18 = vld [vmem:[%s2300_s0 + $0x50] sm:$0xff]  ;;  %v1626_v22 = vld [vmem:[%s2302_s3 + $0x28] sm:$0xff] }
   0x6   :  { %157 = vmatpush.bf16.msra.mxu0 %v1619_v1  ;;  %355 = vmatpush.bf16.msra.mxu1 %v1628_v17  ;;  %v44_v19 = vld [vmem:[%s2300_s0 + $0x58] sm:$0xff]  ;;  %v1627_v21 = vld [vmem:[%s2302_s3 + $0x30] sm:$0xff]  ;;  %v1625_v23 = vld [vmem:[%s2302_s3 + $0x20] sm:$0xff] }
   0x7   :  { %v70_v20 = vpack.c.bf16 %v44_v19, %v43_v18  ;;  %v45_v24 = vld [vmem:[%s2300_s0 + $0x60] sm:$0xff]  ;;  %v46_v25 = vld [vmem:[%s2300_s0 + $0x68] sm:$0xff]  ;;  %v1624_v26 = vld [vmem:[%s2302_s3 + $0x18] sm:$0xff] }
   0x8   :  { %v71_v27 = vpack.c.bf16 %v46_v25, %v45_v24  ;;  %v1623_v28 = vld [vmem:[%s2302_s3 + $0x10] sm:$0xff]  ;;  %v1622_v29 = vld [vmem:[%s2302_s3 + $0x8] sm:$0xff]  ;;  %v1621_v30 = vld [vmem:[%s2302_s3] sm:$0xff] }
   0x9   :  { %1507 = vmatmul.msk.bf16.vlgmr.msra.gmra.mxu0 %vm101_vm0, %v65_v4  ;;  %v47_v31 = vld [vmem:[%s2300_s0 + $0x70] sm:$0xff]  ;;  %v48_v32 = vld [vmem:[%s2300_s0 + $0x78] sm:$0xff]  ;;  %v49_v34 = vld [vmem:[%s2300_s0 + $0x80] sm:$0xff] }
   0xa   :  { %356 = vmatpush.bf16.msra.mxu1 %v1627_v21  ;;  %v72_v33 = vpack.c.bf16 %v48_v32, %v47_v31  ;;  %v50_v35 = vld [vmem:[%s2300_s0 + $0x88] sm:$0xff]  ;;  %v1923_v38 = vld [vmem:[%s2301_s2] ss:$0 sm:$0xff]  ;;  %v51_v44 = vld [vmem:[%s2300_s0 + $0x90] sm:$0xff] }
   0xb   :  { %v73_v36 = vpack.c.bf16 %v50_v35, %v49_v34  ;;  %v52_v45 = vld [vmem:[%s2300_s0 + $0x98] sm:$0xff]  ;;  %v53_v54 = vld [vmem:[%s2300_s0 + $0xa0] sm:$0xff]  ;;  %v54_v55 = vld [vmem:[%s2300_s0 + $0xa8] sm:$0xff] }
   0xc   :  { %v74_v47 = vpack.c.bf16 %v52_v45, %v51_v44  ;;  %v75_v57 = vpack.c.bf16 %v54_v55, %v53_v54  ;;  %v55_v0 = vld [vmem:[%s2300_s0 + $0xb0] sm:$0xff]  ;;  %v56_v1 = vld [vmem:[%s2300_s0 + $0xb8] sm:$0xff]  ;;  %v58_v11 = vld [vmem:[%s2300_s0 + $0xc8] sm:$0xff] }
   0xd   :  { %v76_v3 = vpack.c.bf16 %v56_v1, %v55_v0  ;;  %v60_v21 = vld [vmem:[%s2300_s0 + $0xd8] sm:$0xff]  ;;  %v61_v31 = vld [vmem:[%s2300_s0 + $0xe0] sm:$0xff]  ;;  %v62_v32 = vld [vmem:[%s2300_s0 + $0xe8] sm:$0xff] }
   0xe   :  { %357 = vmatpush.bf16.msra.mxu1 %v1626_v22  ;;  %v1635_v34 = vld [vmem:[%s2304_s5 + $0x30] sm:$0xff]  ;;  %v79_v35 = vpack.c.bf16 %v62_v32, %v61_v31 }
  0x12   :  { %358 = vmatpush.bf16.msra.mxu1 %v1625_v23 }
  0x16   :  { %359 = vmatpush.bf16.msra.mxu1 %v1624_v26 }
  0x19   :  { %1508 = vmatmul.msk.bf16.gmra.mxu0 %vm101_vm0, %v66_v7 }
  0x1a   :  { %360 = vmatpush.bf16.msra.mxu1 %v1623_v28  ;;  %v1636_v28 = vld [vmem:[%s2304_s5 + $0x38] sm:$0xff] }
  0x1b   :  { %560 = vmatpush.bf16.msra.mxu2 %v1636_v28 }
  0x1e   :  { %361 = vmatpush.bf16.msra.mxu1 %v1622_v29 }
  0x1f   :  { %561 = vmatpush.bf16.msra.mxu2 %v1635_v34 }
  0x22   :  { %362 = vmatpush.bf16.msra.mxu1 %v1621_v30 }
  0x29   :  { %1509 = vmatmul.msk.bf16.gmra.mxu0 %vm101_vm0, %v67_v10  ;;  %v57_v10 = vld [vmem:[%s2300_s0 + $0xc0] sm:$0xff] }
  0x39   :  { %1510 = vmatmul.msk.bf16.gmra.mxu0 %vm101_vm0, %v68_v13  ;;  %v77_v13 = vpack.c.bf16 %v58_v11, %v57_v10 }
  0x49   :  { %1511 = vmatmul.msk.bf16.gmra.mxu0 %vm101_vm0, %v69_v16 }
  0x59   :  { %1512 = vmatmul.msk.bf16.gmra.mxu0 %vm101_vm0, %v70_v20  ;;  %v59_v20 = vld [vmem:[%s2300_s0 + $0xd0] sm:$0xff] }
  0x5a   :  { %v78_v23 = vpack.c.bf16 %v60_v21, %v59_v20 }
  0x69   :  { %1513 = vmatmul.msk.bf16.gmra.mxu0 %vm101_vm0, %v71_v27 }
  0x79   :  { %1514 = vmatmul.msk.bf16.gmra.mxu0 %vm101_vm0, %v72_v33 }
  0x86   :  { %v159_v37 = vpop.f32.mrf.mxu0 }
  0x87   :  { %v160_v39 = vadd.f32 %v1923_v38, %v159_v37  ;;  %v1634_v37 = vld [vmem:[%s2304_s5 + $0x28] sm:$0xff] }
  0x88   :  { %562 = vmatpush.bf16.msra.mxu2 %v1634_v37 }
  0x89   :  { %1515 = vmatmul.msk.bf16.gmra.mxu0 %vm101_vm0, %v73_v36  ;;  %v239_v42 = vmax.f32 %v160_v39, 0.0  ;;  %v1633_v39 = vld [vmem:[%s2304_s5 + $0x20] sm:$0xff] }
  0x8c   :  { %563 = vmatpush.bf16.msra.mxu2 %v1633_v39 }
  0x8e   :  { %v161_v40 = vpop.f32.mrf.mxu0 }
  0x8f   :  { %v162_v41 = vadd.f32 %v1923_v38, %v161_v40 }
  0x91   :  { %v240_v43 = vmax.f32 %v162_v41, 0.0 }
  0x93   :  { %v271_v46 = vpack.c.bf16 %v240_v43, %v239_v42  ;;  %v1632_v43 = vld [vmem:[%s2304_s5 + $0x18] sm:$0xff] }
  0x94   :  { %564 = vmatpush.bf16.msra.mxu2 %v1632_v43 }
  0x95   :  { %363 = vmatmul.bf16.vlgmr.msra.gmra.mxu1 %v271_v46  ;;  %v63_v46 = vld [vmem:[%s2300_s0 + $0xf0] sm:$0xff] }
  0x96   :  { %v164_v48 = vpop.f32.mrf.mxu0 }
  0x97   :  { %v165_v49 = vadd.f32 %v1923_v38, %v164_v48 }
  0x99   :  { %1516 = vmatmul.msk.bf16.gmra.mxu0 %vm101_vm0, %v74_v47  ;;  %v241_v52 = vmax.f32 %v165_v49, 0.0  ;;  %v64_v47 = vld [vmem:[%s2300_s0 + $0xf8] sm:$0xff]  ;;  %v1631_v49 = vld [vmem:[%s2304_s5 + $0x10] sm:$0xff] }
  0x9a   :  { %565 = vmatpush.bf16.msra.mxu2 %v1631_v49 }
  0x9e   :  { %v166_v50 = vpop.f32.mrf.mxu0 }
  0x9f   :  { %v167_v51 = vadd.f32 %v1923_v38, %v166_v50  ;;  %v80_v50 = vpack.c.bf16 %v64_v47, %v63_v46 }
  0xa1   :  { %v242_v53 = vmax.f32 %v167_v51, 0.0 }
  0xa3   :  { %v272_v56 = vpack.c.bf16 %v242_v53, %v241_v52  ;;  %v1630_v52 = vld [vmem:[%s2304_s5 + $0x8] sm:$0xff]  ;;  %v1629_v53 = vld [vmem:[%s2304_s5] sm:$0xff] }
  0xa4   :  { %566 = vmatpush.bf16.msra.mxu2 %v1630_v52 }
  0xa5   :  { %368 = vmatmul.bf16.gmra.mxu1 %v272_v56 }
  0xa6   :  { %v169_v58 = vpop.f32.mrf.mxu0 }
  0xa7   :  { %v170_v59 = vadd.f32 %v1923_v38, %v169_v58 }
  0xa8   :  { %567 = vmatpush.bf16.msra.mxu2 %v1629_v53 }
  0xa9   :  { %1517 = vmatmul.msk.bf16.gmra.mxu0 %vm101_vm0, %v75_v57  ;;  %v243_v62 = vmax.f32 %v170_v59, 0.0 }
  0xae   :  { %v171_v60 = vpop.f32.mrf.mxu0 }
  0xaf   :  { %v172_v61 = vadd.f32 %v1923_v38, %v171_v60 }
  0xb1   :  { %v244_v63 = vmax.f32 %v172_v61, 0.0 }
  0xb3   :  { %v273_v2 = vpack.c.bf16 %v244_v63, %v243_v62 }
  0xb5   :  { %373 = vmatmul.bf16.gmra.mxu1 %v273_v2 }
  0xb6   :  { %v174_v4 = vpop.f32.mrf.mxu0 }
  0xb7   :  { %v175_v5 = vadd.f32 %v1923_v38, %v174_v4  ;;  %v2020_v4 = vld [vmem:[%s2303_s4] ss:$0 sm:$0xff] }
  0xb9   :  { %1518 = vmatmul.msk.bf16.gmra.mxu0 %vm101_vm0, %v76_v3  ;;  %v245_v8 = vmax.f32 %v175_v5, 0.0 }
  0xbe   :  { %v176_v6 = vpop.f32.mrf.mxu0 }
  0xbf   :  { %v177_v7 = vadd.f32 %v1923_v38, %v176_v6 }
  0xc1   :  { %v246_v9 = vmax.f32 %v177_v7, 0.0 }
  0xc3   :  { %v274_v12 = vpack.c.bf16 %v246_v9, %v245_v8 }
  0xc5   :  { %378 = vmatmul.bf16.gmra.mxu1 %v274_v12 }
  0xc6   :  { %v179_v14 = vpop.f32.mrf.mxu0 }
  0xc7   :  { %v180_v15 = vadd.f32 %v1923_v38, %v179_v14 }
  0xc9   :  { %1519 = vmatmul.msk.bf16.gmra.mxu0 %vm101_vm0, %v77_v13  ;;  %v247_v18 = vmax.f32 %v180_v15, 0.0 }
  0xce   :  { %v181_v16 = vpop.f32.mrf.mxu0 }
  0xcf   :  { %v182_v17 = vadd.f32 %v1923_v38, %v181_v16 }
  0xd1   :  { %v248_v19 = vmax.f32 %v182_v17, 0.0 }
  0xd3   :  { %v275_v22 = vpack.c.bf16 %v248_v19, %v247_v18 }
  0xd5   :  { %383 = vmatmul.bf16.gmra.mxu1 %v275_v22 }
  0xd6   :  { %v184_v24 = vpop.f32.mrf.mxu0 }
  0xd7   :  { %v185_v25 = vadd.f32 %v1923_v38, %v184_v24 }
  0xd9   :  { %1520 = vmatmul.msk.bf16.gmra.mxu0 %vm101_vm0, %v78_v23  ;;  %v249_v29 = vmax.f32 %v185_v25, 0.0 }
  0xde   :  { %v186_v26 = vpop.f32.mrf.mxu0 }
  0xdf   :  { %v187_v27 = vadd.f32 %v1923_v38, %v186_v26 }
  0xe1   :  { %v250_v30 = vmax.f32 %v187_v27, 0.0 }
  0xe3   :  { %v276_v33 = vpack.c.bf16 %v250_v30, %v249_v29 }
  0xe5   :  { %388 = vmatmul.bf16.gmra.mxu1 %v276_v33 }
  0xe6   :  { %v189_v36 = vpop.f32.mrf.mxu0 }
  0xe7   :  { %v190_v40 = vadd.f32 %v1923_v38, %v189_v36 }
  0xe9   :  { %1521 = vmatmul.msk.bf16.gmra.mxu0 %vm101_vm0, %v79_v35  ;;  %v251_v44 = vmax.f32 %v190_v40, 0.0 }
  0xee   :  { %v191_v41 = vpop.f32.mrf.mxu0 }
  0xef   :  { %v192_v42 = vadd.f32 %v1923_v38, %v191_v41 }
  0xf1   :  { %v252_v45 = vmax.f32 %v192_v42, 0.0 }
  0xf3   :  { %v277_v48 = vpack.c.bf16 %v252_v45, %v251_v44 }
  0xf5   :  { %393 = vmatmul.bf16.gmra.mxu1 %v277_v48 }
  0xf6   :  { %v194_v51 = vpop.f32.mrf.mxu0 }
  0xf7   :  { %v195_v54 = vadd.f32 %v1923_v38, %v194_v51 }
  0xf9   :  { %1522 = vmatmul.msk.bf16.gmra.mxu0 %vm101_vm0, %v80_v50  ;;  %v253_v57 = vmax.f32 %v195_v54, 0.0 }
  0xfe   :  { %v196_v55 = vpop.f32.mrf.mxu0 }
  0xff   :  { %v197_v56 = vadd.f32 %v1923_v38, %v196_v55 }
 0x101   :  { %v254_v58 = vmax.f32 %v197_v56, 0.0 }
 0x103   :  { %v278_v59 = vpack.c.bf16 %v254_v58, %v253_v57 }
 0x105   :  { %398 = vmatmul.bf16.gmra.mxu1 %v278_v59 }
 0x106   :  { %v199_v60 = vpop.f32.mrf.mxu0 }
 0x107   :  { %v200_v61 = vadd.f32 %v1923_v38, %v199_v60 }
 0x109   :  { %v255_v0 = vmax.f32 %v200_v61, 0.0 }
 0x10e   :  { %v201_v62 = vpop.f32.mrf.mxu0 }
 0x10f   :  { %v202_v63 = vadd.f32 %v1923_v38, %v201_v62 }
 0x111   :  { %v256_v1 = vmax.f32 %v202_v63, 0.0 }
 0x112   :  { %v364_v2 = vpop.f32.mrf.mxu1 }
 0x113   :  { %v279_v3 = vpack.c.bf16 %v256_v1, %v255_v0  ;;  %v365_v6 = vadd.f32 %v2020_v4, %v364_v2 }
 0x115   :  { %403 = vmatmul.bf16.gmra.mxu1 %v279_v3  ;;  %v444_v9 = vmax.f32 %v365_v6, 0.0 }
 0x116   :  { %v204_v5 = vpop.f32.mrf.mxu0 }
 0x117   :  { %v205_v10 = vadd.f32 %v1923_v38, %v204_v5 }
 0x119   :  { %v257_v15 = vmax.f32 %v205_v10, 0.0 }
 0x11a   :  { %v366_v7 = vpop.f32.mrf.mxu1 }
 0x11b   :  { %v367_v8 = vadd.f32 %v2020_v4, %v366_v7 }
 0x11d   :  { %v445_v11 = vmax.f32 %v367_v8, 0.0 }
 0x11e   :  { %v206_v12 = vpop.f32.mrf.mxu0 }
 0x11f   :  { %v207_v13 = vadd.f32 %v1923_v38, %v206_v12  ;;  %v476_v14 = vpack.c.bf16 %v445_v11, %v444_v9 }
 0x121   :  { %v258_v16 = vmax.f32 %v207_v13, 0.0  ;;  %568 = vmatmul.bf16.vlgmr.msra.gmra.mxu2 %v476_v14 }
 0x122   :  { %v369_v17 = vpop.f32.mrf.mxu1 }
 0x123   :  { %v280_v18 = vpack.c.bf16 %v258_v16, %v257_v15  ;;  %v370_v20 = vadd.f32 %v2020_v4, %v369_v17 }
 0x125   :  { %408 = vmatmul.bf16.gmra.mxu1 %v280_v18  ;;  %v446_v23 = vmax.f32 %v370_v20, 0.0 }
 0x126   :  { %v209_v19 = vpop.f32.mrf.mxu0 }
 0x127   :  { %v210_v24 = vadd.f32 %v1923_v38, %v209_v19 }
 0x129   :  { %v259_v29 = vmax.f32 %v210_v24, 0.0 }
 0x12a   :  { %v371_v21 = vpop.f32.mrf.mxu1 }
 0x12b   :  { %v372_v22 = vadd.f32 %v2020_v4, %v371_v21 }
 0x12d   :  { %v447_v25 = vmax.f32 %v372_v22, 0.0 }
 0x12e   :  { %v211_v26 = vpop.f32.mrf.mxu0 }
 0x12f   :  { %v212_v27 = vadd.f32 %v1923_v38, %v211_v26  ;;  %v477_v28 = vpack.c.bf16 %v447_v25, %v446_v23  ;;  %v1644_v26 = vld [vmem:[%s2306_s7 + $0x38] sm:$0xff] }
 0x130   :  { %765 = vmatpush.bf16.msra.mxu3 %v1644_v26 }
 0x131   :  { %v260_v30 = vmax.f32 %v212_v27, 0.0  ;;  %573 = vmatmul.bf16.gmra.mxu2 %v477_v28  ;;  %v1643_v28 = vld [vmem:[%s2306_s7 + $0x30] sm:$0xff] }
 0x132   :  { %v374_v31 = vpop.f32.mrf.mxu1 }
 0x133   :  { %v281_v32 = vpack.c.bf16 %v260_v30, %v259_v29  ;;  %v375_v34 = vadd.f32 %v2020_v4, %v374_v31 }
 0x134   :  { %766 = vmatpush.bf16.msra.mxu3 %v1643_v28 }
 0x135   :  { %413 = vmatmul.bf16.gmra.mxu1 %v281_v32  ;;  %v448_v37 = vmax.f32 %v375_v34, 0.0  ;;  %v1642_v32 = vld [vmem:[%s2306_s7 + $0x28] sm:$0xff] }
 0x136   :  { %v214_v33 = vpop.f32.mrf.mxu0 }
 0x137   :  { %v215_v39 = vadd.f32 %v1923_v38, %v214_v33 }
 0x138   :  { %767 = vmatpush.bf16.msra.mxu3 %v1642_v32 }
 0x139   :  { %v261_v44 = vmax.f32 %v215_v39, 0.0 }
 0x13a   :  { %v376_v35 = vpop.f32.mrf.mxu1 }
 0x13b   :  { %v377_v36 = vadd.f32 %v2020_v4, %v376_v35 }
 0x13d   :  { %v449_v40 = vmax.f32 %v377_v36, 0.0 }
 0x13e   :  { %v216_v41 = vpop.f32.mrf.mxu0 }
 0x13f   :  { %v217_v42 = vadd.f32 %v1923_v38, %v216_v41  ;;  %v478_v43 = vpack.c.bf16 %v449_v40, %v448_v37  ;;  %v1641_v37 = vld [vmem:[%s2306_s7 + $0x20] sm:$0xff] }
 0x140   :  { %768 = vmatpush.bf16.msra.mxu3 %v1641_v37 }
 0x141   :  { %v262_v45 = vmax.f32 %v217_v42, 0.0  ;;  %578 = vmatmul.bf16.gmra.mxu2 %v478_v43 }
 0x142   :  { %v379_v46 = vpop.f32.mrf.mxu1 }
 0x143   :  { %v282_v47 = vpack.c.bf16 %v262_v45, %v261_v44  ;;  %v380_v49 = vadd.f32 %v2020_v4, %v379_v46  ;;  %v1640_v45 = vld [vmem:[%s2306_s7 + $0x18] sm:$0xff] }
 0x144   :  { %769 = vmatpush.bf16.msra.mxu3 %v1640_v45 }
 0x145   :  { %418 = vmatmul.bf16.gmra.mxu1 %v282_v47  ;;  %v450_v52 = vmax.f32 %v380_v49, 0.0  ;;  %v1639_v47 = vld [vmem:[%s2306_s7 + $0x10] sm:$0xff]  ;;  %v1638_v49 = vld [vmem:[%s2306_s7 + $0x8] sm:$0xff] }
 0x146   :  { %v219_v48 = vpop.f32.mrf.mxu0 }
 0x147   :  { %v220_v53 = vadd.f32 %v1923_v38, %v219_v48 }
 0x148   :  { %770 = vmatpush.bf16.msra.mxu3 %v1639_v47 }
 0x149   :  { %v263_v58 = vmax.f32 %v220_v53, 0.0  ;;  %v1637_v53 = vld [vmem:[%s2306_s7] sm:$0xff] }
 0x14a   :  { %v381_v50 = vpop.f32.mrf.mxu1 }
 0x14b   :  { %v382_v51 = vadd.f32 %v2020_v4, %v381_v50 }
 0x14c   :  { %771 = vmatpush.bf16.msra.mxu3 %v1638_v49 }
 0x14d   :  { %v451_v54 = vmax.f32 %v382_v51, 0.0 }
 0x14e   :  { %v221_v55 = vpop.f32.mrf.mxu0 }
 0x14f   :  { %v222_v56 = vadd.f32 %v1923_v38, %v221_v55  ;;  %v479_v57 = vpack.c.bf16 %v451_v54, %v450_v52 }
 0x150   :  { %772 = vmatpush.bf16.msra.mxu3 %v1637_v53 }
 0x151   :  { %v264_v59 = vmax.f32 %v222_v56, 0.0  ;;  %583 = vmatmul.bf16.gmra.mxu2 %v479_v57 }
 0x152   :  { %v384_v60 = vpop.f32.mrf.mxu1 }
 0x153   :  { %v283_v61 = vpack.c.bf16 %v264_v59, %v263_v58  ;;  %v385_v63 = vadd.f32 %v2020_v4, %v384_v60 }
 0x155   :  { %423 = vmatmul.bf16.gmra.mxu1 %v283_v61  ;;  %v452_v2 = vmax.f32 %v385_v63, 0.0 }
 0x156   :  { %v224_v62 = vpop.f32.mrf.mxu0 }
 0x157   :  { %v225_v3 = vadd.f32 %v1923_v38, %v224_v62 }
 0x159   :  { %v265_v9 = vmax.f32 %v225_v3, 0.0 }
 0x15a   :  { %v386_v0 = vpop.f32.mrf.mxu1 }
 0x15b   :  { %v387_v1 = vadd.f32 %v2020_v4, %v386_v0  ;;  %v2081_v0 = vld [vmem:[%s2305_s6] ss:$0 sm:$0xff] }
 0x15d   :  { %v453_v5 = vmax.f32 %v387_v1, 0.0 }
 0x15e   :  { %v226_v6 = vpop.f32.mrf.mxu0 }
 0x15f   :  { %v227_v7 = vadd.f32 %v1923_v38, %v226_v6  ;;  %v480_v8 = vpack.c.bf16 %v453_v5, %v452_v2 }
 0x161   :  { %v266_v10 = vmax.f32 %v227_v7, 0.0  ;;  %588 = vmatmul.bf16.gmra.mxu2 %v480_v8 }
 0x162   :  { %v389_v11 = vpop.f32.mrf.mxu1 }
 0x163   :  { %v284_v12 = vpack.c.bf16 %v266_v10, %v265_v9  ;;  %v390_v14 = vadd.f32 %v2020_v4, %v389_v11 }
 0x165   :  { %428 = vmatmul.bf16.gmra.mxu1 %v284_v12  ;;  %v454_v17 = vmax.f32 %v390_v14, 0.0 }
 0x166   :  { %v229_v13 = vpop.f32.mrf.mxu0 }
 0x167   :  { %v230_v18 = vadd.f32 %v1923_v38, %v229_v13 }
 0x169   :  { %v267_v23 = vmax.f32 %v230_v18, 0.0 }
 0x16a   :  { %v391_v15 = vpop.f32.mrf.mxu1 }
 0x16b   :  { %v392_v16 = vadd.f32 %v2020_v4, %v391_v15 }
 0x16d   :  { %v455_v19 = vmax.f32 %v392_v16, 0.0 }
 0x16e   :  { %v231_v20 = vpop.f32.mrf.mxu0 }
 0x16f   :  { %v232_v21 = vadd.f32 %v1923_v38, %v231_v20  ;;  %v481_v22 = vpack.c.bf16 %v455_v19, %v454_v17 }
 0x171   :  { %v268_v24 = vmax.f32 %v232_v21, 0.0  ;;  %593 = vmatmul.bf16.gmra.mxu2 %v481_v22 }
 0x172   :  { %v394_v25 = vpop.f32.mrf.mxu1 }
 0x173   :  { %v285_v27 = vpack.c.bf16 %v268_v24, %v267_v23  ;;  %v395_v30 = vadd.f32 %v2020_v4, %v394_v25 }
 0x175   :  { %433 = vmatmul.bf16.gmra.mxu1 %v285_v27  ;;  %v456_v34 = vmax.f32 %v395_v30, 0.0 }
 0x176   :  { %v234_v29 = vpop.f32.mrf.mxu0 }
 0x177   :  { %v235_v35 = vadd.f32 %v1923_v38, %v234_v29 }
 0x179   :  { %v269_v42 = vmax.f32 %v235_v35, 0.0 }
 0x17a   :  { %v396_v31 = vpop.f32.mrf.mxu1 }
 0x17b   :  { %v397_v33 = vadd.f32 %v2020_v4, %v396_v31 }
 0x17d   :  { %v457_v36 = vmax.f32 %v397_v33, 0.0 }
 0x17e   :  { %v236_v39 = vpop.f32.mrf.mxu0 }
 0x17f   :  { %v237_v40 = vadd.f32 %v1923_v38, %v236_v39  ;;  %v482_v41 = vpack.c.bf16 %v457_v36, %v456_v34 }
 0x181   :  { %v270_v43 = vmax.f32 %v237_v40, 0.0  ;;  %598 = vmatmul.bf16.gmra.mxu2 %v482_v41 }
 0x182   :  { %v399_v44 = vpop.f32.mrf.mxu1 }
 0x183   :  { %v286_v46 = vpack.c.bf16 %v270_v43, %v269_v42  ;;  %v400_v38 = vadd.f32 %v2020_v4, %v399_v44 }
 0x185   :  { %438 = vmatmul.bf16.gmra.mxu1 %v286_v46  ;;  %v458_v51 = vmax.f32 %v400_v38, 0.0 }
 0x18a   :  { %v401_v48 = vpop.f32.mrf.mxu1 }
 0x18b   :  { %v402_v50 = vadd.f32 %v2020_v4, %v401_v48 }
 0x18d   :  { %v459_v52 = vmax.f32 %v402_v50, 0.0 }
 0x18f   :  { %v483_v54 = vpack.c.bf16 %v459_v52, %v458_v51 }
 0x191   :  { %603 = vmatmul.bf16.gmra.mxu2 %v483_v54 }
 0x192   :  { %v404_v55 = vpop.f32.mrf.mxu1 }
 0x193   :  { %v405_v56 = vadd.f32 %v2020_v4, %v404_v55 }
 0x195   :  { %v460_v59 = vmax.f32 %v405_v56, 0.0 }
 0x19a   :  { %v406_v57 = vpop.f32.mrf.mxu1 }
 0x19b   :  { %v407_v58 = vadd.f32 %v2020_v4, %v406_v57 }
 0x19d   :  { %v461_v60 = vmax.f32 %v407_v58, 0.0 }
 0x19f   :  { %v484_v61 = vpack.c.bf16 %v461_v60, %v460_v59 }
 0x1a1   :  { %608 = vmatmul.bf16.gmra.mxu2 %v484_v61 }
 0x1a2   :  { %v409_v62 = vpop.f32.mrf.mxu1 }
 0x1a3   :  { %v410_v1 = vadd.f32 %v2020_v4, %v409_v62 }
 0x1a4   :  { %v569_v63 = vpop.f32.mrf.mxu2 }
 0x1a5   :  { %v570_v3 = vadd.f32 %v2081_v0, %v569_v63  ;;  %v462_v7 = vmax.f32 %v410_v1, 0.0 }
 0x1a7   :  { %v649_v10 = vmax.f32 %v570_v3, 0.0 }
 0x1aa   :  { %v411_v2 = vpop.f32.mrf.mxu1 }
 0x1ab   :  { %v412_v5 = vadd.f32 %v2020_v4, %v411_v2 }
 0x1ac   :  { %v571_v6 = vpop.f32.mrf.mxu2 }
 0x1ad   :  { %v463_v8 = vmax.f32 %v412_v5, 0.0  ;;  %v572_v9 = vadd.f32 %v2081_v0, %v571_v6 }
 0x1af   :  { %v650_v11 = vmax.f32 %v572_v9, 0.0  ;;  %v485_v12 = vpack.c.bf16 %v463_v8, %v462_v7 }
 0x1b1   :  { %613 = vmatmul.bf16.gmra.mxu2 %v485_v12  ;;  %v681_v13 = vpack.c.bf16 %v650_v11, %v649_v10 }
 0x1b2   :  { %v414_v14 = vpop.f32.mrf.mxu1 }
 0x1b3   :  { %773 = vmatmul.bf16.vlgmr.msra.gmra.mxu3 %v681_v13  ;;  %v415_v16 = vadd.f32 %v2020_v4, %v414_v14 }
 0x1b4   :  { %v574_v15 = vpop.f32.mrf.mxu2 }
 0x1b5   :  { %v575_v18 = vadd.f32 %v2081_v0, %v574_v15  ;;  %v464_v21 = vmax.f32 %v415_v16, 0.0 }
 0x1b7   :  { %v651_v24 = vmax.f32 %v575_v18, 0.0 }
 0x1ba   :  { %v416_v17 = vpop.f32.mrf.mxu1 }
 0x1bb   :  { %v417_v19 = vadd.f32 %v2020_v4, %v416_v17 }
 0x1bc   :  { %v576_v20 = vpop.f32.mrf.mxu2 }
 0x1bd   :  { %v465_v22 = vmax.f32 %v417_v19, 0.0  ;;  %v577_v23 = vadd.f32 %v2081_v0, %v576_v20 }
 0x1bf   :  { %v652_v25 = vmax.f32 %v577_v23, 0.0  ;;  %v486_v26 = vpack.c.bf16 %v465_v22, %v464_v21 }
 0x1c1   :  { %618 = vmatmul.bf16.gmra.mxu2 %v486_v26  ;;  %v682_v27 = vpack.c.bf16 %v652_v25, %v651_v24 }
 0x1c2   :  { %v419_v28 = vpop.f32.mrf.mxu1 }
 0x1c3   :  { %778 = vmatmul.bf16.gmra.mxu3 %v682_v27  ;;  %v420_v30 = vadd.f32 %v2020_v4, %v419_v28 }
 0x1c4   :  { %v579_v29 = vpop.f32.mrf.mxu2 }
 0x1c5   :  { %v580_v32 = vadd.f32 %v2081_v0, %v579_v29  ;;  %v466_v35 = vmax.f32 %v420_v30, 0.0 }
 0x1c7   :  { %v653_v39 = vmax.f32 %v580_v32, 0.0 }
 0x1ca   :  { %v421_v31 = vpop.f32.mrf.mxu1 }
 0x1cb   :  { %v422_v33 = vadd.f32 %v2020_v4, %v421_v31 }
 0x1cc   :  { %v581_v34 = vpop.f32.mrf.mxu2 }
 0x1cd   :  { %v467_v36 = vmax.f32 %v422_v33, 0.0  ;;  %v582_v37 = vadd.f32 %v2081_v0, %v581_v34 }
 0x1cf   :  { %v654_v40 = vmax.f32 %v582_v37, 0.0  ;;  %v487_v41 = vpack.c.bf16 %v467_v36, %v466_v35 }
 0x1d1   :  { %623 = vmatmul.bf16.gmra.mxu2 %v487_v41  ;;  %v683_v42 = vpack.c.bf16 %v654_v40, %v653_v39 }
 0x1d2   :  { %v424_v43 = vpop.f32.mrf.mxu1 }
 0x1d3   :  { %783 = vmatmul.bf16.gmra.mxu3 %v683_v42  ;;  %v425_v45 = vadd.f32 %v2020_v4, %v424_v43 }
 0x1d4   :  { %v584_v44 = vpop.f32.mrf.mxu2 }
 0x1d5   :  { %v585_v47 = vadd.f32 %v2081_v0, %v584_v44  ;;  %v468_v49 = vmax.f32 %v425_v45, 0.0 }
 0x1d7   :  { %v655_v52 = vmax.f32 %v585_v47, 0.0 }
 0x1da   :  { %v426_v46 = vpop.f32.mrf.mxu1 }
 0x1db   :  { %v427_v38 = vadd.f32 %v2020_v4, %v426_v46 }
 0x1dc   :  { %v586_v48 = vpop.f32.mrf.mxu2 }
 0x1dd   :  { %v469_v50 = vmax.f32 %v427_v38, 0.0  ;;  %v587_v51 = vadd.f32 %v2081_v0, %v586_v48 }
 0x1df   :  { %v488_v53 = vpack.c.bf16 %v469_v50, %v468_v49  ;;  %v656_v54 = vmax.f32 %v587_v51, 0.0  ;;  %v2118_v49 = vld [vmem:[%s2307_s8] ss:$0 sm:$0xff] }
 0x1e1   :  { %628 = vmatmul.bf16.gmra.mxu2 %v488_v53  ;;  %v684_v55 = vpack.c.bf16 %v656_v54, %v655_v52 }
 0x1e2   :  { %v429_v56 = vpop.f32.mrf.mxu1 }
 0x1e3   :  { %788 = vmatmul.bf16.gmra.mxu3 %v684_v55  ;;  %v430_v58 = vadd.f32 %v2020_v4, %v429_v56 }
 0x1e4   :  { %v589_v57 = vpop.f32.mrf.mxu2 }
 0x1e5   :  { %v590_v60 = vadd.f32 %v2081_v0, %v589_v57  ;;  %v470_v63 = vmax.f32 %v430_v58, 0.0 }
 0x1e7   :  { %v657_v3 = vmax.f32 %v590_v60, 0.0 }
 0x1ea   :  { %v431_v59 = vpop.f32.mrf.mxu1 }
 0x1eb   :  { %v432_v61 = vadd.f32 %v2020_v4, %v431_v59 }
 0x1ec   :  { %v591_v62 = vpop.f32.mrf.mxu2 }
 0x1ed   :  { %v471_v1 = vmax.f32 %v432_v61, 0.0  ;;  %v592_v2 = vadd.f32 %v2081_v0, %v591_v62 }
 0x1ef   :  { %v489_v5 = vpack.c.bf16 %v471_v1, %v470_v63  ;;  %v658_v6 = vmax.f32 %v592_v2, 0.0 }
 0x1f1   :  { %633 = vmatmul.bf16.gmra.mxu2 %v489_v5  ;;  %v685_v7 = vpack.c.bf16 %v658_v6, %v657_v3 }
 0x1f2   :  { %v434_v8 = vpop.f32.mrf.mxu1 }
 0x1f3   :  { %793 = vmatmul.bf16.gmra.mxu3 %v685_v7  ;;  %v435_v10 = vadd.f32 %v2020_v4, %v434_v8 }
 0x1f4   :  { %v594_v9 = vpop.f32.mrf.mxu2 }
 0x1f5   :  { %v595_v12 = vadd.f32 %v2081_v0, %v594_v9  ;;  %v472_v15 = vmax.f32 %v435_v10, 0.0 }
 0x1f7   :  { %v659_v18 = vmax.f32 %v595_v12, 0.0 }
 0x1fa   :  { %v436_v11 = vpop.f32.mrf.mxu1 }
 0x1fb   :  { %v437_v13 = vadd.f32 %v2020_v4, %v436_v11 }
 0x1fc   :  { %v596_v14 = vpop.f32.mrf.mxu2 }
 0x1fd   :  { %v473_v16 = vmax.f32 %v437_v13, 0.0  ;;  %v597_v17 = vadd.f32 %v2081_v0, %v596_v14 }
 0x1ff   :  { %v490_v19 = vpack.c.bf16 %v473_v16, %v472_v15  ;;  %v660_v20 = vmax.f32 %v597_v17, 0.0 }
 0x201   :  { %638 = vmatmul.bf16.gmra.mxu2 %v490_v19  ;;  %v686_v21 = vpack.c.bf16 %v660_v20, %v659_v18 }
 0x202   :  { %v439_v22 = vpop.f32.mrf.mxu1 }
 0x203   :  { %798 = vmatmul.bf16.gmra.mxu3 %v686_v21  ;;  %v440_v24 = vadd.f32 %v2020_v4, %v439_v22 }
 0x204   :  { %v599_v23 = vpop.f32.mrf.mxu2 }
 0x205   :  { %v600_v26 = vadd.f32 %v2081_v0, %v599_v23  ;;  %v474_v29 = vmax.f32 %v440_v24, 0.0 }
 0x207   :  { %v661_v32 = vmax.f32 %v600_v26, 0.0 }
 0x20a   :  { %v441_v25 = vpop.f32.mrf.mxu1 }
 0x20b   :  { %v442_v27 = vadd.f32 %v2020_v4, %v441_v25 }
 0x20c   :  { %v601_v28 = vpop.f32.mrf.mxu2 }
 0x20d   :  { %v475_v30 = vmax.f32 %v442_v27, 0.0  ;;  %v602_v31 = vadd.f32 %v2081_v0, %v601_v28 }
 0x20f   :  { %v491_v33 = vpack.c.bf16 %v475_v30, %v474_v29  ;;  %v662_v34 = vmax.f32 %v602_v31, 0.0 }
 0x211   :  { %643 = vmatmul.bf16.gmra.mxu2 %v491_v33  ;;  %v687_v35 = vpack.c.bf16 %v662_v34, %v661_v32 }
 0x213   :  { %803 = vmatmul.bf16.gmra.mxu3 %v687_v35 }
 0x214   :  { %v604_v36 = vpop.f32.mrf.mxu2 }
 0x215   :  { %v605_v37 = vadd.f32 %v2081_v0, %v604_v36 }
 0x217   :  { %v663_v41 = vmax.f32 %v605_v37, 0.0 }
 0x21c   :  { %v606_v39 = vpop.f32.mrf.mxu2 }
 0x21d   :  { %v607_v40 = vadd.f32 %v2081_v0, %v606_v39 }
 0x21f   :  { %v664_v42 = vmax.f32 %v607_v40, 0.0 }
 0x221   :  { %v688_v4 = vpack.c.bf16 %v664_v42, %v663_v41 }
 0x223   :  { %808 = vmatmul.bf16.gmra.mxu3 %v688_v4 }
 0x224   :  { %v609_v43 = vpop.f32.mrf.mxu2 }
 0x225   :  { %v610_v44 = vadd.f32 %v2081_v0, %v609_v43 }
 0x227   :  { %v665_v47 = vmax.f32 %v610_v44, 0.0 }
 0x22c   :  { %v611_v45 = vpop.f32.mrf.mxu2 }
 0x22d   :  { %v612_v46 = vadd.f32 %v2081_v0, %v611_v45 }
 0x22f   :  { %v666_v38 = vmax.f32 %v612_v46, 0.0 }
 0x231   :  { %v689_v48 = vpack.c.bf16 %v666_v38, %v665_v47 }
 0x233   :  { %813 = vmatmul.bf16.gmra.mxu3 %v689_v48 }
 0x234   :  { %v614_v50 = vpop.f32.mrf.mxu2 }
 0x235   :  { %v615_v54 = vadd.f32 %v2081_v0, %v614_v50 }
 0x236   :  { %v774_v51 = vpop.f32.mrf.mxu3 }
 0x237   :  { %v775_v52 = vadd.f32 %v2118_v49, %v774_v51  ;;  %v667_v59 = vmax.f32 %v615_v54, 0.0 }
 0x239   :  { %v854_v53 = vsub.f32 0.0, %v775_v52 }
 0x23b   :  { %v886_v55 = vmul.f32 1.442695, %v854_v53 }
 0x23c   :  { %v616_v56 = vpop.f32.mrf.mxu2 }
 0x23d   :  { %1649 = vpow2.f32 %v886_v55  ;;  %v617_v57 = vadd.f32 %v2081_v0, %v616_v56 }
 0x23e   :  { %v776_v58 = vpop.f32.mrf.mxu3 }
 0x23f   :  { %v668_v60 = vmax.f32 %v617_v57, 0.0  ;;  %v777_v61 = vadd.f32 %v2118_v49, %v776_v58 }
 0x241   :  { %v855_v62 = vsub.f32 0.0, %v777_v61  ;;  %v690_v63 = vpack.c.bf16 %v668_v60, %v667_v59 }
 0x243   :  { %v1650_v1 = vpop.eup %1649  ;;  %v888_v2 = vmul.f32 1.442695, %v855_v62  ;;  %818 = vmatmul.bf16.gmra.mxu3 %v690_v63 }
 0x244   :  { %v950_v3 = vadd.f32 1.0, %v1650_v1  ;;  %v619_v5 = vpop.f32.mrf.mxu2 }
 0x245   :  { %1651 = vpow2.f32 %v888_v2  ;;  %v620_v10 = vadd.f32 %v2081_v0, %v619_v5 }
 0x246   :  { %1653 = vrcp.f32 %v950_v3  ;;  %v779_v6 = vpop.f32.mrf.mxu3  ;;  %v991_v22 = vand.u32 2147483647, %v950_v3  ;;  %v993_v23 = vand.u32 2147483648, %v950_v3  ;;  %vm987_vm2 = vweird.f32 %v950_v3 }
 0x247   :  { %v780_v7 = vadd.f32 %v2118_v49, %v779_v6  ;;  %v669_v19 = vmax.f32 %v620_v10, 0.0 }
 0x248   :  { %v994_v31 = vor.u32 1.1754944e-38, %v993_v23  ;;  %vm992_vm5 = vcmp.eq.f32.partialorder %v991_v22, 8.507059e+37 }
 0x249   :  { %v856_v8 = vsub.f32 0.0, %v780_v7 }
 0x24b   :  { %v1652_v9 = vpop.eup %1651  ;;  %v890_v11 = vmul.f32 1.442695, %v856_v8 }
 0x24c   :  { %v1654_v12 = vpop.eup %1653  ;;  %v951_v13 = vadd.f32 1.0, %v1652_v9  ;;  %v621_v14 = vpop.f32.mrf.mxu2 }
 0x24d   :  { %v983_v15 = vmul.f32 %v1654_v12, %v950_v3  ;;  %1655 = vpow2.f32 %v890_v11  ;;  %v622_v16 = vadd.f32 %v2081_v0, %v621_v14  ;;  %vm988_vm1 = vweird.f32 %v1654_v12 }
 0x24e   :  { %1657 = vrcp.f32 %v951_v13  ;;  %v781_v17 = vpop.f32.mrf.mxu3  ;;  %vm989_vm3 = vmor %vm987_vm2, %vm988_vm1  ;;  %v1008_v41 = vand.u32 2147483648, %v951_v13  ;;  %v1006_v4 = vand.u32 2147483647, %v951_v13  ;;  %vm1002_vm7 = vweird.f32 %v951_v13 }
 0x24f   :  { %v984_v18 = vsub.f32 1.0, %v983_v15  ;;  %v670_v20 = vmax.f32 %v622_v16, 0.0  ;;  %v782_v21 = vadd.f32 %v2118_v49, %v781_v17 }
 0x250   :  { %v1009_v38 = vor.u32 1.1754944e-38, %v1008_v41  ;;  %vm1007_vm9 = vcmp.eq.f32.partialorder %v1006_v4, 8.507059e+37 }
 0x251   :  { %v985_v24 = vmul.f32 %v1654_v12, %v984_v18  ;;  %v857_v25 = vsub.f32 0.0, %v782_v21  ;;  %v691_v26 = vpack.c.bf16 %v670_v20, %v669_v19 }
 0x253   :  { %v1656_v27 = vpop.eup %1655  ;;  %v986_v28 = vadd.f32 %v1654_v12, %v985_v24  ;;  %v892_v29 = vmul.f32 1.442695, %v857_v25  ;;  %823 = vmatmul.bf16.gmra.mxu3 %v691_v26 }
 0x254   :  { %v1658_v30 = vpop.eup %1657  ;;  %v952_v32 = vadd.f32 1.0, %v1656_v27  ;;  %v624_v33 = vpop.f32.mrf.mxu2 }
 0x255   :  { %v990_v34 = vsel %vm989_vm3, %v1654_v12, %v986_v28  ;;  %v998_v35 = vmul.f32 %v1658_v30, %v951_v13  ;;  %1659 = vpow2.f32 %v892_v29  ;;  %vm1003_vm6 = vweird.f32 %v1658_v30 }
 0x256   :  { %v995_v36 = vsel %vm992_vm5, %v994_v31, %v990_v34  ;;  %1661 = vrcp.f32 %v952_v32  ;;  %v784_v37 = vpop.f32.mrf.mxu3  ;;  %vm1004_vm8 = vmor %vm1002_vm7, %vm1003_vm6  ;;  %v625_v50 = vadd.f32 %v2081_v0, %v624_v33  ;;  %v1021_v59 = vand.u32 2147483647, %v952_v32 }
 0x257   :  { %1463 = vst.msk [vmem:[%s2308_s9] sm:$0xff] %vm1462_vm4, %v995_v36  ;;  %v999_v39 = vsub.f32 1.0, %v998_v35  ;;  %v785_v40 = vadd.f32 %v2118_v49, %v784_v37  ;;  %v1023_v60 = vand.u32 2147483648, %v952_v32  ;;  %vm1017_vm11 = vweird.f32 %v952_v32 }
 0x258   :  { %v671_v61 = vmax.f32 %v625_v50, 0.0  ;;  %vm1022_vm13 = vcmp.eq.f32.partialorder %v1021_v59, 8.507059e+37 }
 0x259   :  { %v1000_v42 = vmul.f32 %v1658_v30, %v999_v39  ;;  %v858_v43 = vsub.f32 0.0, %v785_v40  ;;  %v1024_v8 = vor.u32 1.1754944e-38, %v1023_v60 }
 0x25b   :  { %v1660_v44 = vpop.eup %1659  ;;  %v1001_v45 = vadd.f32 %v1658_v30, %v1000_v42  ;;  %v894_v46 = vmul.f32 1.442695, %v858_v43 }
 0x25c   :  { %v1662_v47 = vpop.eup %1661  ;;  %v953_v48 = vadd.f32 1.0, %v1660_v44  ;;  %v626_v51 = vpop.f32.mrf.mxu2 }
 0x25d   :  { %v1005_v52 = vsel %vm1004_vm8, %v1658_v30, %v1001_v45  ;;  %v1013_v53 = vmul.f32 %v1662_v47, %v952_v32  ;;  %1663 = vpow2.f32 %v894_v46  ;;  %v627_v57 = vadd.f32 %v2081_v0, %v626_v51 }
 0x25e   :  { %v1010_v54 = vsel %vm1007_vm9, %v1009_v38, %v1005_v52  ;;  %1665 = vrcp.f32 %v953_v48  ;;  %v786_v55 = vpop.f32.mrf.mxu3  ;;  %vm1018_vm10 = vweird.f32 %v1662_v47  ;;  %v1038_v17 = vand.u32 2147483648, %v953_v48 }
 0x25f   :  { %1464 = vst.msk [vmem:[%s2308_s9 + $0x8] sm:$0xff] %vm1462_vm4, %v1010_v54  ;;  %v1014_v56 = vsub.f32 1.0, %v1013_v53  ;;  %v787_v58 = vadd.f32 %v2118_v49, %v786_v55  ;;  %v672_v63 = vmax.f32 %v627_v57, 0.0  ;;  %vm1019_vm12 = vmor %vm1017_vm11, %vm1018_vm10  ;;  %v1036_v19 = vand.u32 2147483647, %v953_v48 }
 0x260   :  { %vm1032_vm15 = vweird.f32 %v953_v48  ;;  %v1039_v25 = vor.u32 1.1754944e-38, %v1038_v17 }
 0x261   :  { %v1015_v62 = vmul.f32 %v1662_v47, %v1014_v56  ;;  %v859_v1 = vsub.f32 0.0, %v787_v58  ;;  %v692_v6 = vpack.c.bf16 %v672_v63, %v671_v61  ;;  %vm1037_vm1 = vcmp.eq.f32.partialorder %v1036_v19, 8.507059e+37 }
 0x263   :  { %v1664_v2 = vpop.eup %1663  ;;  %v1016_v3 = vadd.f32 %v1662_v47, %v1015_v62  ;;  %v896_v5 = vmul.f32 1.442695, %v859_v1  ;;  %828 = vmatmul.bf16.gmra.mxu3 %v692_v6 }
 0x264   :  { %v1666_v7 = vpop.eup %1665  ;;  %v954_v9 = vadd.f32 1.0, %v1664_v2  ;;  %v629_v10 = vpop.f32.mrf.mxu2 }
 0x265   :  { %v1020_v11 = vsel %vm1019_vm12, %v1662_v47, %v1016_v3  ;;  %v1028_v12 = vmul.f32 %v1666_v7, %v953_v48  ;;  %1667 = vpow2.f32 %v896_v5  ;;  %vm1033_vm14 = vweird.f32 %v1666_v7 }
 0x266   :  { %v1025_v13 = vsel %vm1022_vm13, %v1024_v8, %v1020_v11  ;;  %1669 = vrcp.f32 %v954_v9  ;;  %v789_v14 = vpop.f32.mrf.mxu3  ;;  %vm1034_vm0 = vmor %vm1032_vm15, %vm1033_vm14  ;;  %v630_v27 = vadd.f32 %v2081_v0, %v629_v10  ;;  %v1051_v36 = vand.u32 2147483647, %v954_v9 }
 0x267   :  { %1465 = vst.msk [vmem:[%s2308_s9 + $0x10] sm:$0xff] %vm1462_vm4, %v1025_v13  ;;  %v1029_v15 = vsub.f32 1.0, %v1028_v12  ;;  %v790_v16 = vadd.f32 %v2118_v49, %v789_v14  ;;  %v1053_v37 = vand.u32 2147483648, %v954_v9  ;;  %vm1047_vm3 = vweird.f32 %v954_v9 }
 0x268   :  { %v673_v39 = vmax.f32 %v630_v27, 0.0  ;;  %vm1052_vm6 = vcmp.eq.f32.partialorder %v1051_v36, 8.507059e+37 }
 0x269   :  { %v1030_v18 = vmul.f32 %v1666_v7, %v1029_v15  ;;  %v860_v20 = vsub.f32 0.0, %v790_v16  ;;  %v1054_v47 = vor.u32 1.1754944e-38, %v1053_v37 }
 0x26b   :  { %v1668_v21 = vpop.eup %1667  ;;  %v1031_v22 = vadd.f32 %v1666_v7, %v1030_v18  ;;  %v898_v23 = vmul.f32 1.442695, %v860_v20 }
 0x26c   :  { %v1670_v24 = vpop.eup %1669  ;;  %v955_v26 = vadd.f32 1.0, %v1668_v21  ;;  %v631_v28 = vpop.f32.mrf.mxu2 }
 0x26d   :  { %v1035_v29 = vsel %vm1034_vm0, %v1666_v7, %v1031_v22  ;;  %v1043_v30 = vmul.f32 %v1670_v24, %v954_v9  ;;  %1671 = vpow2.f32 %v898_v23  ;;  %v632_v34 = vadd.f32 %v2081_v0, %v631_v28 }
 0x26e   :  { %v1040_v31 = vsel %vm1037_vm1, %v1039_v25, %v1035_v29  ;;  %1673 = vrcp.f32 %v955_v26  ;;  %v791_v32 = vpop.f32.mrf.mxu3  ;;  %vm1048_vm2 = vweird.f32 %v1670_v24  ;;  %v1068_v56 = vand.u32 2147483648, %v955_v26 }
 0x26f   :  { %1466 = vst.msk [vmem:[%s2308_s9 + $0x18] sm:$0xff] %vm1462_vm4, %v1040_v31  ;;  %v1044_v33 = vsub.f32 1.0, %v1043_v30  ;;  %v792_v35 = vadd.f32 %v2118_v49, %v791_v32  ;;  %v674_v41 = vmax.f32 %v632_v34, 0.0  ;;  %vm1049_vm5 = vmor %vm1047_vm3, %vm1048_vm2  ;;  %v1066_v58 = vand.u32 2147483647, %v955_v26 }
 0x270   :  { %vm1062_vm8 = vweird.f32 %v955_v26  ;;  %v1069_v1 = vor.u32 1.1754944e-38, %v1068_v56 }
 0x271   :  { %v1045_v40 = vmul.f32 %v1670_v24, %v1044_v33  ;;  %v861_v42 = vsub.f32 0.0, %v792_v35  ;;  %v693_v44 = vpack.c.bf16 %v674_v41, %v673_v39  ;;  %vm1067_vm10 = vcmp.eq.f32.partialorder %v1066_v58, 8.507059e+37 }
 0x273   :  { %v1672_v4 = vpop.eup %1671  ;;  %v1046_v43 = vadd.f32 %v1670_v24, %v1045_v40  ;;  %v900_v45 = vmul.f32 1.442695, %v861_v42  ;;  %833 = vmatmul.bf16.gmra.mxu3 %v693_v44 }
 0x274   :  { %v1674_v46 = vpop.eup %1673  ;;  %v956_v38 = vadd.f32 1.0, %v1672_v4  ;;  %v634_v48 = vpop.f32.mrf.mxu2 }
 0x275   :  { %v1050_v50 = vsel %vm1049_vm5, %v1670_v24, %v1046_v43  ;;  %v1058_v51 = vmul.f32 %v1674_v46, %v955_v26  ;;  %1675 = vpow2.f32 %v900_v45  ;;  %vm1063_vm7 = vweird.f32 %v1674_v46 }
 0x276   :  { %v1055_v52 = vsel %vm1052_vm6, %v1054_v47, %v1050_v50  ;;  %1677 = vrcp.f32 %v956_v38  ;;  %v794_v53 = vpop.f32.mrf.mxu3  ;;  %vm1064_vm9 = vmor %vm1062_vm8, %vm1063_vm7  ;;  %v635_v3 = vadd.f32 %v2081_v0, %v634_v48  ;;  %v1081_v13 = vand.u32 2147483647, %v956_v38 }
 0x277   :  { %1467 = vst.msk [vmem:[%s2308_s9 + $0x20] sm:$0xff] %vm1462_vm4, %v1055_v52  ;;  %v1059_v54 = vsub.f32 1.0, %v1058_v51  ;;  %v795_v55 = vadd.f32 %v2118_v49, %v794_v53  ;;  %v1083_v14 = vand.u32 2147483648, %v956_v38  ;;  %vm1077_vm12 = vweird.f32 %v956_v38 }
 0x278   :  { %v675_v15 = vmax.f32 %v635_v3, 0.0  ;;  %vm1082_vm14 = vcmp.eq.f32.partialorder %v1081_v13, 8.507059e+37 }
 0x279   :  { %v1060_v57 = vmul.f32 %v1674_v46, %v1059_v54  ;;  %v862_v59 = vsub.f32 0.0, %v795_v55  ;;  %v1084_v24 = vor.u32 1.1754944e-38, %v1083_v14 }
 0x27b   :  { %v1676_v60 = vpop.eup %1675  ;;  %v1061_v61 = vadd.f32 %v1674_v46, %v1060_v57  ;;  %v902_v62 = vmul.f32 1.442695, %v862_v59 }
 0x27c   :  { %v1678_v63 = vpop.eup %1677  ;;  %v957_v2 = vadd.f32 1.0, %v1676_v60  ;;  %v636_v5 = vpop.f32.mrf.mxu2 }
 0x27d   :  { %v1065_v6 = vsel %vm1064_vm9, %v1674_v46, %v1061_v61  ;;  %v1073_v7 = vmul.f32 %v1678_v63, %v956_v38  ;;  %1679 = vpow2.f32 %v902_v62  ;;  %v637_v11 = vadd.f32 %v2081_v0, %v636_v5 }
 0x27e   :  { %v1070_v8 = vsel %vm1067_vm10, %v1069_v1, %v1065_v6  ;;  %1681 = vrcp.f32 %v957_v2  ;;  %v796_v9 = vpop.f32.mrf.mxu3  ;;  %vm1078_vm11 = vweird.f32 %v1678_v63  ;;  %v1098_v33 = vand.u32 2147483648, %v957_v2 }
 0x27f   :  { %1468 = vst.msk [vmem:[%s2308_s9 + $0x28] sm:$0xff] %vm1462_vm4, %v1070_v8  ;;  %v1074_v10 = vsub.f32 1.0, %v1073_v7  ;;  %v797_v12 = vadd.f32 %v2118_v49, %v796_v9  ;;  %v676_v17 = vmax.f32 %v637_v11, 0.0  ;;  %vm1079_vm13 = vmor %vm1077_vm12, %vm1078_vm11  ;;  %v1096_v35 = vand.u32 2147483647, %v957_v2 }
 0x280   :  { %vm1092_vm0 = vweird.f32 %v957_v2  ;;  %v1099_v42 = vor.u32 1.1754944e-38, %v1098_v33 }
 0x281   :  { %v1075_v16 = vmul.f32 %v1678_v63, %v1074_v10  ;;  %v863_v18 = vsub.f32 0.0, %v797_v12  ;;  %v694_v21 = vpack.c.bf16 %v676_v17, %v675_v15  ;;  %vm1097_vm2 = vcmp.eq.f32.partialorder %v1096_v35, 8.507059e+37 }
 0x283   :  { %v1680_v19 = vpop.eup %1679  ;;  %v1076_v20 = vadd.f32 %v1678_v63, %v1075_v16  ;;  %v904_v22 = vmul.f32 1.442695, %v863_v18  ;;  %838 = vmatmul.bf16.gmra.mxu3 %v694_v21 }
 0x284   :  { %v1682_v23 = vpop.eup %1681  ;;  %v958_v25 = vadd.f32 1.0, %v1680_v19  ;;  %v639_v26 = vpop.f32.mrf.mxu2 }
 0x285   :  { %v1080_v27 = vsel %vm1079_vm13, %v1678_v63, %v1076_v20  ;;  %v1088_v28 = vmul.f32 %v1682_v23, %v957_v2  ;;  %1683 = vpow2.f32 %v904_v22  ;;  %vm1093_vm15 = vweird.f32 %v1682_v23 }
 0x286   :  { %v1085_v29 = vsel %vm1082_vm14, %v1084_v24, %v1080_v27  ;;  %1685 = vrcp.f32 %v958_v25  ;;  %v799_v30 = vpop.f32.mrf.mxu3  ;;  %vm1094_vm1 = vmor %vm1092_vm0, %vm1093_vm15  ;;  %v640_v43 = vadd.f32 %v2081_v0, %v639_v26  ;;  %v1111_v52 = vand.u32 2147483647, %v958_v25 }
 0x287   :  { %1469 = vst.msk [vmem:[%s2308_s9 + $0x30] sm:$0xff] %vm1462_vm4, %v1085_v29  ;;  %v1089_v31 = vsub.f32 1.0, %v1088_v28  ;;  %v800_v32 = vadd.f32 %v2118_v49, %v799_v30  ;;  %v1113_v53 = vand.u32 2147483648, %v958_v25  ;;  %vm1107_vm5 = vweird.f32 %v958_v25 }
 0x288   :  { %v677_v54 = vmax.f32 %v640_v43, 0.0  ;;  %vm1112_vm7 = vcmp.eq.f32.partialorder %v1111_v52, 8.507059e+37 }
 0x289   :  { %v1090_v34 = vmul.f32 %v1682_v23, %v1089_v31  ;;  %v864_v36 = vsub.f32 0.0, %v800_v32  ;;  %v1114_v63 = vor.u32 1.1754944e-38, %v1113_v53 }
 0x28b   :  { %v1684_v37 = vpop.eup %1683  ;;  %v1091_v39 = vadd.f32 %v1682_v23, %v1090_v34  ;;  %v906_v40 = vmul.f32 1.442695, %v864_v36 }
 0x28c   :  { %v1686_v41 = vpop.eup %1685  ;;  %v959_v4 = vadd.f32 1.0, %v1684_v37  ;;  %v641_v44 = vpop.f32.mrf.mxu2 }
 0x28d   :  { %v1095_v45 = vsel %vm1094_vm1, %v1682_v23, %v1091_v39  ;;  %v1103_v46 = vmul.f32 %v1686_v41, %v958_v25  ;;  %1687 = vpow2.f32 %v906_v40  ;;  %v642_v50 = vadd.f32 %v2081_v0, %v641_v44 }
 0x28e   :  { %v1100_v47 = vsel %vm1097_vm2, %v1099_v42, %v1095_v45  ;;  %1689 = vrcp.f32 %v959_v4  ;;  %v801_v38 = vpop.f32.mrf.mxu3  ;;  %vm1108_vm3 = vweird.f32 %v1686_v41  ;;  %v1128_v10 = vand.u32 2147483648, %v959_v4 }
 0x28f   :  { %1470 = vst.msk [vmem:[%s2308_s9 + $0x38] sm:$0xff] %vm1462_vm4, %v1100_v47  ;;  %v1104_v48 = vsub.f32 1.0, %v1103_v46  ;;  %v802_v51 = vadd.f32 %v2118_v49, %v801_v38  ;;  %v678_v56 = vmax.f32 %v642_v50, 0.0  ;;  %vm1109_vm6 = vmor %vm1107_vm5, %vm1108_vm3  ;;  %v1126_v12 = vand.u32 2147483647, %v959_v4 }
 0x290   :  { %vm1122_vm9 = vweird.f32 %v959_v4  ;;  %v1129_v18 = vor.u32 1.1754944e-38, %v1128_v10 }
 0x291   :  { %v1105_v55 = vmul.f32 %v1686_v41, %v1104_v48  ;;  %v865_v57 = vsub.f32 0.0, %v802_v51  ;;  %v695_v60 = vpack.c.bf16 %v678_v56, %v677_v54  ;;  %vm1127_vm11 = vcmp.eq.f32.partialorder %v1126_v12, 8.507059e+37 }
 0x293   :  { %v1688_v58 = vpop.eup %1687  ;;  %v1106_v59 = vadd.f32 %v1686_v41, %v1105_v55  ;;  %v908_v61 = vmul.f32 1.442695, %v865_v57  ;;  %843 = vmatmul.bf16.gmra.mxu3 %v695_v60 }
 0x294   :  { %v1690_v62 = vpop.eup %1689  ;;  %v960_v1 = vadd.f32 1.0, %v1688_v58  ;;  %v644_v2 = vpop.f32.mrf.mxu2 }
 0x295   :  { %v1110_v3 = vsel %vm1109_vm6, %v1686_v41, %v1106_v59  ;;  %v1118_v5 = vmul.f32 %v1690_v62, %v959_v4  ;;  %1691 = vpow2.f32 %v908_v61  ;;  %vm1123_vm8 = vweird.f32 %v1690_v62 }
 0x296   :  { %v1115_v6 = vsel %vm1112_vm7, %v1114_v63, %v1110_v3  ;;  %1693 = vrcp.f32 %v960_v1  ;;  %v804_v7 = vpop.f32.mrf.mxu3  ;;  %vm1124_vm10 = vmor %vm1122_vm9, %vm1123_vm8  ;;  %v645_v20 = vadd.f32 %v2081_v0, %v644_v2  ;;  %v1141_v29 = vand.u32 2147483647, %v960_v1 }
 0x297   :  { %1471 = vst.msk [vmem:[%s2308_s9 + $0x40] sm:$0xff] %vm1462_vm4, %v1115_v6  ;;  %v1119_v8 = vsub.f32 1.0, %v1118_v5  ;;  %v805_v9 = vadd.f32 %v2118_v49, %v804_v7  ;;  %v1143_v30 = vand.u32 2147483648, %v960_v1  ;;  %vm1137_vm13 = vweird.f32 %v960_v1 }
 0x298   :  { %v679_v31 = vmax.f32 %v645_v20, 0.0  ;;  %vm1142_vm15 = vcmp.eq.f32.partialorder %v1141_v29, 8.507059e+37 }
 0x299   :  { %v1120_v11 = vmul.f32 %v1690_v62, %v1119_v8  ;;  %v866_v13 = vsub.f32 0.0, %v805_v9  ;;  %v1144_v41 = vor.u32 1.1754944e-38, %v1143_v30 }
 0x29b   :  { %v1692_v14 = vpop.eup %1691  ;;  %v1121_v15 = vadd.f32 %v1690_v62, %v1120_v11  ;;  %v910_v16 = vmul.f32 1.442695, %v866_v13 }
 0x29c   :  { %v1694_v17 = vpop.eup %1693  ;;  %v961_v19 = vadd.f32 1.0, %v1692_v14  ;;  %v646_v21 = vpop.f32.mrf.mxu2 }
 0x29d   :  { %v1125_v22 = vsel %vm1124_vm10, %v1690_v62, %v1121_v15  ;;  %v1133_v23 = vmul.f32 %v1694_v17, %v960_v1  ;;  %1695 = vpow2.f32 %v910_v16  ;;  %v647_v27 = vadd.f32 %v2081_v0, %v646_v21 }
 0x29e   :  { %v1130_v24 = vsel %vm1127_vm11, %v1129_v18, %v1125_v22  ;;  %1697 = vrcp.f32 %v961_v19  ;;  %v806_v25 = vpop.f32.mrf.mxu3  ;;  %vm1138_vm12 = vweird.f32 %v1694_v17  ;;  %v1158_v47 = vand.u32 2147483648, %v961_v19 }
 0x29f   :  { %1472 = vst.msk [vmem:[%s2308_s9 + $0x48] sm:$0xff] %vm1462_vm4, %v1130_v24  ;;  %v1134_v26 = vsub.f32 1.0, %v1133_v23  ;;  %v807_v28 = vadd.f32 %v2118_v49, %v806_v25  ;;  %v680_v33 = vmax.f32 %v647_v27, 0.0  ;;  %vm1139_vm14 = vmor %vm1137_vm13, %vm1138_vm12  ;;  %v1156_v48 = vand.u32 2147483647, %v961_v19 }
 0x2a0   :  { %vm1152_vm1 = vweird.f32 %v961_v19  ;;  %v1159_v55 = vor.u32 1.1754944e-38, %v1158_v47 }
 0x2a1   :  { %v1135_v32 = vmul.f32 %v1694_v17, %v1134_v26  ;;  %v867_v34 = vsub.f32 0.0, %v807_v28  ;;  %v696_v37 = vpack.c.bf16 %v680_v33, %v679_v31  ;;  %vm1157_vm3 = vcmp.eq.f32.partialorder %v1156_v48, 8.507059e+37 }
 0x2a3   :  { %v1696_v35 = vpop.eup %1695  ;;  %v1136_v36 = vadd.f32 %v1694_v17, %v1135_v32  ;;  %v912_v39 = vmul.f32 1.442695, %v867_v34  ;;  %848 = vmatmul.bf16.gmra.mxu3 %v696_v37 }
 0x2a4   :  { %v1698_v40 = vpop.eup %1697  ;;  %v962_v42 = vadd.f32 1.0, %v1696_v35 }
 0x2a5   :  { %v1140_v4 = vsel %vm1139_vm14, %v1694_v17, %v1136_v36  ;;  %v1148_v0 = vmul.f32 %v1698_v40, %v961_v19  ;;  %1699 = vpow2.f32 %v912_v39  ;;  %vm1153_vm0 = vweird.f32 %v1698_v40 }
 0x2a6   :  { %v1145_v43 = vsel %vm1142_vm15, %v1144_v41, %v1140_v4  ;;  %1701 = vrcp.f32 %v962_v42  ;;  %v809_v44 = vpop.f32.mrf.mxu3  ;;  %vm1154_vm2 = vmor %vm1152_vm1, %vm1153_vm0  ;;  %v1173_v63 = vand.u32 2147483648, %v962_v42  ;;  %v1171_v2 = vand.u32 2147483647, %v962_v42 }
 0x2a7   :  { %1473 = vst.msk [vmem:[%s2308_s9 + $0x50] sm:$0xff] %vm1462_vm4, %v1145_v43  ;;  %v1149_v45 = vsub.f32 1.0, %v1148_v0  ;;  %v810_v46 = vadd.f32 %v2118_v49, %v809_v44  ;;  %vm1167_vm6 = vweird.f32 %v962_v42 }
 0x2a8   :  { %v1174_v9 = vor.u32 1.1754944e-38, %v1173_v63  ;;  %vm1172_vm8 = vcmp.eq.f32.partialorder %v1171_v2, 8.507059e+37 }
 0x2a9   :  { %v1150_v38 = vmul.f32 %v1698_v40, %v1149_v45  ;;  %v868_v50 = vsub.f32 0.0, %v810_v46 }
 0x2ab   :  { %v1700_v51 = vpop.eup %1699  ;;  %v1151_v52 = vadd.f32 %v1698_v40, %v1150_v38  ;;  %v914_v53 = vmul.f32 1.442695, %v868_v50 }
 0x2ac   :  { %v1702_v54 = vpop.eup %1701  ;;  %v963_v56 = vadd.f32 1.0, %v1700_v51 }
 0x2ad   :  { %v1155_v57 = vsel %vm1154_vm2, %v1698_v40, %v1151_v52  ;;  %v1163_v58 = vmul.f32 %v1702_v54, %v962_v42  ;;  %1703 = vpow2.f32 %v914_v53  ;;  %vm1168_vm5 = vweird.f32 %v1702_v54 }
 0x2ae   :  { %v1160_v59 = vsel %vm1157_vm3, %v1159_v55, %v1155_v57  ;;  %1705 = vrcp.f32 %v963_v56  ;;  %v811_v60 = vpop.f32.mrf.mxu3  ;;  %vm1169_vm7 = vmor %vm1167_vm6, %vm1168_vm5  ;;  %v1188_v17 = vand.u32 2147483648, %v963_v56  ;;  %v1186_v19 = vand.u32 2147483647, %v963_v56 }
 0x2af   :  { %1474 = vst.msk [vmem:[%s2308_s9 + $0x58] sm:$0xff] %vm1462_vm4, %v1160_v59  ;;  %v1164_v61 = vsub.f32 1.0, %v1163_v58  ;;  %v812_v62 = vadd.f32 %v2118_v49, %v811_v60  ;;  %vm1182_vm10 = vweird.f32 %v963_v56 }
 0x2b0   :  { %v1189_v25 = vor.u32 1.1754944e-38, %v1188_v17  ;;  %vm1187_vm12 = vcmp.eq.f32.partialorder %v1186_v19, 8.507059e+37 }
 0x2b1   :  { %v1165_v1 = vmul.f32 %v1702_v54, %v1164_v61  ;;  %v869_v3 = vsub.f32 0.0, %v812_v62 }
 0x2b3   :  { %v1704_v5 = vpop.eup %1703  ;;  %v1166_v6 = vadd.f32 %v1702_v54, %v1165_v1  ;;  %v916_v7 = vmul.f32 1.442695, %v869_v3 }
 0x2b4   :  { %v1706_v8 = vpop.eup %1705  ;;  %v964_v10 = vadd.f32 1.0, %v1704_v5 }
 0x2b5   :  { %v1170_v11 = vsel %vm1169_vm7, %v1702_v54, %v1166_v6  ;;  %v1178_v12 = vmul.f32 %v1706_v8, %v963_v56  ;;  %1707 = vpow2.f32 %v916_v7  ;;  %vm1183_vm9 = vweird.f32 %v1706_v8 }
 0x2b6   :  { %v1175_v13 = vsel %vm1172_vm8, %v1174_v9, %v1170_v11  ;;  %1709 = vrcp.f32 %v964_v10  ;;  %v814_v14 = vpop.f32.mrf.mxu3  ;;  %vm1184_vm11 = vmor %vm1182_vm10, %vm1183_vm9  ;;  %v1203_v33 = vand.u32 2147483648, %v964_v10  ;;  %v1201_v35 = vand.u32 2147483647, %v964_v10 }
 0x2b7   :  { %1475 = vst.msk [vmem:[%s2308_s9 + $0x60] sm:$0xff] %vm1462_vm4, %v1175_v13  ;;  %v1179_v15 = vsub.f32 1.0, %v1178_v12  ;;  %v815_v16 = vadd.f32 %v2118_v49, %v814_v14  ;;  %vm1197_vm14 = vweird.f32 %v964_v10 }
 0x2b8   :  { %v1204_v42 = vor.u32 1.1754944e-38, %v1203_v33  ;;  %vm1202_vm0 = vcmp.eq.f32.partialorder %v1201_v35, 8.507059e+37 }
 0x2b9   :  { %v1180_v18 = vmul.f32 %v1706_v8, %v1179_v15  ;;  %v870_v20 = vsub.f32 0.0, %v815_v16 }
 0x2bb   :  { %v1708_v21 = vpop.eup %1707  ;;  %v1181_v22 = vadd.f32 %v1706_v8, %v1180_v18  ;;  %v918_v23 = vmul.f32 1.442695, %v870_v20 }
 0x2bc   :  { %v1710_v24 = vpop.eup %1709  ;;  %v965_v26 = vadd.f32 1.0, %v1708_v21 }
 0x2bd   :  { %v1185_v27 = vsel %vm1184_vm11, %v1706_v8, %v1181_v22  ;;  %v1193_v28 = vmul.f32 %v1710_v24, %v964_v10  ;;  %1711 = vpow2.f32 %v918_v23  ;;  %vm1198_vm13 = vweird.f32 %v1710_v24 }
 0x2be   :  { %v1190_v29 = vsel %vm1187_vm12, %v1189_v25, %v1185_v27  ;;  %1713 = vrcp.f32 %v965_v26  ;;  %v816_v30 = vpop.f32.mrf.mxu3  ;;  %vm1199_vm15 = vmor %vm1197_vm14, %vm1198_vm13  ;;  %v1218_v38 = vand.u32 2147483648, %v965_v26  ;;  %v1216_v50 = vand.u32 2147483647, %v965_v26 }
 0x2bf   :  { %1476 = vst.msk [vmem:[%s2308_s9 + $0x68] sm:$0xff] %vm1462_vm4, %v1190_v29  ;;  %v1194_v31 = vsub.f32 1.0, %v1193_v28  ;;  %v817_v32 = vadd.f32 %v2118_v49, %v816_v30  ;;  %vm1212_vm2 = vweird.f32 %v965_v26 }
 0x2c0   :  { %v1219_v56 = vor.u32 1.1754944e-38, %v1218_v38  ;;  %vm1217_vm5 = vcmp.eq.f32.partialorder %v1216_v50, 8.507059e+37  ;;  %v2235_v50 = vld [vmem:[%s2307_s8] ss:$0 sm:$0xff] }
 0x2c1   :  { %v1195_v34 = vmul.f32 %v1710_v24, %v1194_v31  ;;  %v871_v36 = vsub.f32 0.0, %v817_v32 }
 0x2c3   :  { %v1712_v37 = vpop.eup %1711  ;;  %v1196_v39 = vadd.f32 %v1710_v24, %v1195_v34  ;;  %v920_v40 = vmul.f32 1.442695, %v871_v36 }
 0x2c4   :  { %v1714_v41 = vpop.eup %1713  ;;  %v966_v4 = vadd.f32 1.0, %v1712_v37 }
 0x2c5   :  { %v1200_v0 = vsel %vm1199_vm15, %v1710_v24, %v1196_v39  ;;  %v1208_v43 = vmul.f32 %v1714_v41, %v965_v26  ;;  %1715 = vpow2.f32 %v920_v40  ;;  %vm1213_vm1 = vweird.f32 %v1714_v41 }
 0x2c6   :  { %v1205_v44 = vsel %vm1202_vm0, %v1204_v42, %v1200_v0  ;;  %1717 = vrcp.f32 %v966_v4  ;;  %v819_v45 = vpop.f32.mrf.mxu3  ;;  %vm1214_vm3 = vmor %vm1212_vm2, %vm1213_vm1  ;;  %v1233_v1 = vand.u32 2147483648, %v966_v4  ;;  %v1231_v3 = vand.u32 2147483647, %v966_v4 }
 0x2c7   :  { %1477 = vst.msk [vmem:[%s2308_s9 + $0x70] sm:$0xff] %vm1462_vm4, %v1205_v44  ;;  %v1209_v46 = vsub.f32 1.0, %v1208_v43  ;;  %v820_v47 = vadd.f32 %v2118_v49, %v819_v45  ;;  %vm1227_vm7 = vweird.f32 %v966_v4 }
 0x2c8   :  { %v1234_v10 = vor.u32 1.1754944e-38, %v1233_v1  ;;  %vm1232_vm9 = vcmp.eq.f32.partialorder %v1231_v3, 8.507059e+37 }
 0x2c9   :  { %v1210_v48 = vmul.f32 %v1714_v41, %v1209_v46  ;;  %v872_v51 = vsub.f32 0.0, %v820_v47 }
 0x2cb   :  { %v1716_v52 = vpop.eup %1715  ;;  %v1211_v53 = vadd.f32 %v1714_v41, %v1210_v48  ;;  %v922_v54 = vmul.f32 1.442695, %v872_v51 }
 0x2cc   :  { %v1718_v55 = vpop.eup %1717  ;;  %v967_v57 = vadd.f32 1.0, %v1716_v52 }
 0x2cd   :  { %v1215_v58 = vsel %vm1214_vm3, %v1714_v41, %v1211_v53  ;;  %v1223_v59 = vmul.f32 %v1718_v55, %v966_v4  ;;  %1719 = vpow2.f32 %v922_v54  ;;  %vm1228_vm6 = vweird.f32 %v1718_v55 }
 0x2ce   :  { %v1220_v60 = vsel %vm1217_vm5, %v1219_v56, %v1215_v58  ;;  %1721 = vrcp.f32 %v967_v57  ;;  %v821_v61 = vpop.f32.mrf.mxu3  ;;  %vm1229_vm8 = vmor %vm1227_vm7, %vm1228_vm6  ;;  %v1248_v18 = vand.u32 2147483648, %v967_v57  ;;  %v1246_v20 = vand.u32 2147483647, %v967_v57 }
 0x2cf   :  { %1478 = vst.msk [vmem:[%s2308_s9 + $0x78] sm:$0xff] %vm1462_vm4, %v1220_v60  ;;  %v1224_v62 = vsub.f32 1.0, %v1223_v59  ;;  %v822_v63 = vadd.f32 %v2118_v49, %v821_v61  ;;  %vm1242_vm11 = vweird.f32 %v967_v57 }
 0x2d0   :  { %v1249_v26 = vor.u32 1.1754944e-38, %v1248_v18  ;;  %vm1247_vm13 = vcmp.eq.f32.partialorder %v1246_v20, 8.507059e+37 }
 0x2d1   :  { %v1225_v2 = vmul.f32 %v1718_v55, %v1224_v62  ;;  %v873_v5 = vsub.f32 0.0, %v822_v63 }
 0x2d3   :  { %v1720_v6 = vpop.eup %1719  ;;  %v1226_v7 = vadd.f32 %v1718_v55, %v1225_v2  ;;  %v924_v8 = vmul.f32 1.442695, %v873_v5 }
 0x2d4   :  { %v1722_v9 = vpop.eup %1721  ;;  %v968_v11 = vadd.f32 1.0, %v1720_v6 }
 0x2d5   :  { %v1230_v12 = vsel %vm1229_vm8, %v1718_v55, %v1226_v7  ;;  %v1238_v13 = vmul.f32 %v1722_v9, %v967_v57  ;;  %1723 = vpow2.f32 %v924_v8  ;;  %vm1243_vm10 = vweird.f32 %v1722_v9 }
 0x2d6   :  { %v1235_v14 = vsel %vm1232_vm9, %v1234_v10, %v1230_v12  ;;  %1725 = vrcp.f32 %v968_v11  ;;  %v824_v15 = vpop.f32.mrf.mxu3  ;;  %vm1244_vm12 = vmor %vm1242_vm11, %vm1243_vm10  ;;  %v1263_v34 = vand.u32 2147483648, %v968_v11  ;;  %v1261_v36 = vand.u32 2147483647, %v968_v11 }
 0x2d7   :  { %1479 = vst.msk [vmem:[%s2308_s9 + $0x80] sm:$0xff] %vm1462_vm4, %v1235_v14  ;;  %v1239_v16 = vsub.f32 1.0, %v1238_v13  ;;  %v825_v17 = vadd.f32 %v2118_v49, %v824_v15  ;;  %vm1257_vm15 = vweird.f32 %v968_v11 }
 0x2d8   :  { %v1264_v4 = vor.u32 1.1754944e-38, %v1263_v34  ;;  %vm1262_vm1 = vcmp.eq.f32.partialorder %v1261_v36, 8.507059e+37 }
 0x2d9   :  { %v1240_v19 = vmul.f32 %v1722_v9, %v1239_v16  ;;  %v874_v21 = vsub.f32 0.0, %v825_v17 }
 0x2db   :  { %v1724_v22 = vpop.eup %1723  ;;  %v1241_v23 = vadd.f32 %v1722_v9, %v1240_v19  ;;  %v926_v24 = vmul.f32 1.442695, %v874_v21 }
 0x2dc   :  { %v1726_v25 = vpop.eup %1725  ;;  %v969_v27 = vadd.f32 1.0, %v1724_v22 }
 0x2dd   :  { %v1245_v28 = vsel %vm1244_vm12, %v1722_v9, %v1241_v23  ;;  %v1253_v29 = vmul.f32 %v1726_v25, %v968_v11  ;;  %1727 = vpow2.f32 %v926_v24  ;;  %vm1258_vm14 = vweird.f32 %v1726_v25 }
 0x2de   :  { %v1250_v30 = vsel %vm1247_vm13, %v1249_v26, %v1245_v28  ;;  %1729 = vrcp.f32 %v969_v27  ;;  %v826_v31 = vpop.f32.mrf.mxu3  ;;  %vm1259_vm0 = vmor %vm1257_vm15, %vm1258_vm14  ;;  %v1278_v46 = vand.u32 2147483648, %v969_v27  ;;  %v1276_v48 = vand.u32 2147483647, %v969_v27 }
 0x2df   :  { %1480 = vst.msk [vmem:[%s2308_s9 + $0x88] sm:$0xff] %vm1462_vm4, %v1250_v30  ;;  %v1254_v32 = vsub.f32 1.0, %v1253_v29  ;;  %v827_v33 = vadd.f32 %v2118_v49, %v826_v31  ;;  %vm1272_vm3 = vweird.f32 %v969_v27 }
 0x2e0   :  { %v1279_v56 = vor.u32 1.1754944e-38, %v1278_v46  ;;  %vm1277_vm6 = vcmp.eq.f32.partialorder %v1276_v48, 8.507059e+37 }
 0x2e1   :  { %v1255_v35 = vmul.f32 %v1726_v25, %v1254_v32  ;;  %v875_v37 = vsub.f32 0.0, %v827_v33 }
 0x2e3   :  { %v1728_v39 = vpop.eup %1727  ;;  %v1256_v40 = vadd.f32 %v1726_v25, %v1255_v35  ;;  %v928_v41 = vmul.f32 1.442695, %v875_v37 }
 0x2e4   :  { %v1730_v42 = vpop.eup %1729  ;;  %v970_v0 = vadd.f32 1.0, %v1728_v39 }
 0x2e5   :  { %v1260_v43 = vsel %vm1259_vm0, %v1726_v25, %v1256_v40  ;;  %v1268_v44 = vmul.f32 %v1730_v42, %v969_v27  ;;  %1731 = vpow2.f32 %v928_v41  ;;  %vm1273_vm2 = vweird.f32 %v1730_v42 }
 0x2e6   :  { %v1265_v45 = vsel %vm1262_vm1, %v1264_v4, %v1260_v43  ;;  %1733 = vrcp.f32 %v970_v0  ;;  %v829_v47 = vpop.f32.mrf.mxu3  ;;  %vm1274_vm5 = vmor %vm1272_vm3, %vm1273_vm2  ;;  %v1293_v63 = vand.u32 2147483648, %v970_v0  ;;  %v1291_v3 = vand.u32 2147483647, %v970_v0 }
 0x2e7   :  { %1481 = vst.msk [vmem:[%s2308_s9 + $0x90] sm:$0xff] %vm1462_vm4, %v1265_v45  ;;  %v1269_v49 = vsub.f32 1.0, %v1268_v44  ;;  %v830_v51 = vadd.f32 %v2235_v50, %v829_v47  ;;  %vm1287_vm8 = vweird.f32 %v970_v0 }
 0x2e8   :  { %v1294_v9 = vor.u32 1.1754944e-38, %v1293_v63  ;;  %vm1292_vm10 = vcmp.eq.f32.partialorder %v1291_v3, 8.507059e+37 }
 0x2e9   :  { %v1270_v38 = vmul.f32 %v1730_v42, %v1269_v49  ;;  %v876_v54 = vsub.f32 0.0, %v830_v51 }
 0x2eb   :  { %v1732_v52 = vpop.eup %1731  ;;  %v1271_v53 = vadd.f32 %v1730_v42, %v1270_v38  ;;  %v930_v60 = vmul.f32 1.442695, %v876_v54 }
 0x2ec   :  { %v1734_v55 = vpop.eup %1733  ;;  %v971_v57 = vadd.f32 1.0, %v1732_v52 }
 0x2ed   :  { %v1275_v58 = vsel %vm1274_vm5, %v1730_v42, %v1271_v53  ;;  %v1283_v59 = vmul.f32 %v1734_v55, %v970_v0  ;;  %vm1288_vm7 = vweird.f32 %v1734_v55 }
 0x2ee   :  { %v1280_v61 = vsel %vm1277_vm6, %v1279_v56, %v1275_v58  ;;  %1735 = vrcp.f32 %v971_v57  ;;  %v831_v1 = vpop.f32.mrf.mxu3  ;;  %vm1289_vm9 = vmor %vm1287_vm8, %vm1288_vm7  ;;  %v1308_v17 = vand.u32 2147483648, %v971_v57  ;;  %v1306_v20 = vand.u32 2147483647, %v971_v57 }
 0x2ef   :  { %1482 = vst.msk [vmem:[%s2308_s9 + $0x98] sm:$0xff] %vm1462_vm4, %v1280_v61  ;;  %v1284_v62 = vsub.f32 1.0, %v1283_v59  ;;  %1737 = vpow2.f32 %v930_v60  ;;  %v832_v5 = vadd.f32 %v2235_v50, %v831_v1  ;;  %vm1302_vm12 = vweird.f32 %v971_v57 }
 0x2f0   :  { %v1309_v24 = vor.u32 1.1754944e-38, %v1308_v17  ;;  %vm1307_vm14 = vcmp.eq.f32.partialorder %v1306_v20, 8.507059e+37 }
 0x2f1   :  { %v1285_v2 = vmul.f32 %v1734_v55, %v1284_v62  ;;  %v877_v7 = vsub.f32 0.0, %v832_v5 }
 0x2f3   :  { %v1286_v6 = vadd.f32 %v1734_v55, %v1285_v2  ;;  %v932_v13 = vmul.f32 1.442695, %v877_v7 }
 0x2f4   :  { %v1736_v8 = vpop.eup %1735 }
 0x2f5   :  { %v1738_v10 = vpop.eup %1737  ;;  %v1290_v11 = vsel %vm1289_vm9, %v1734_v55, %v1286_v6  ;;  %v1298_v12 = vmul.f32 %v1736_v8, %v971_v57  ;;  %1739 = vpow2.f32 %v932_v13  ;;  %vm1303_vm11 = vweird.f32 %v1736_v8 }
 0x2f6   :  { %v1295_v14 = vsel %vm1292_vm10, %v1294_v9, %v1290_v11  ;;  %v972_v15 = vadd.f32 1.0, %v1738_v10  ;;  %v834_v18 = vpop.f32.mrf.mxu3  ;;  %vm1304_vm13 = vmor %vm1302_vm12, %vm1303_vm11 }
 0x2f7   :  { %1483 = vst.msk [vmem:[%s2308_s9 + $0xa0] sm:$0xff] %vm1462_vm4, %v1295_v14  ;;  %v1299_v16 = vsub.f32 1.0, %v1298_v12  ;;  %v835_v21 = vadd.f32 %v2235_v50, %v834_v18 }
 0x2f8   :  { %1741 = vrcp.f32 %v972_v15  ;;  %v1323_v35 = vand.u32 2147483648, %v972_v15  ;;  %v1321_v37 = vand.u32 2147483647, %v972_v15  ;;  %vm1317_vm0 = vweird.f32 %v972_v15 }
 0x2f9   :  { %v1300_v19 = vmul.f32 %v1736_v8, %v1299_v16  ;;  %v878_v23 = vsub.f32 0.0, %v835_v21 }
 0x2fa   :  { %v1324_v0 = vor.u32 1.1754944e-38, %v1323_v35  ;;  %vm1322_vm2 = vcmp.eq.f32.partialorder %v1321_v37, 8.507059e+37 }
 0x2fb   :  { %v1301_v22 = vadd.f32 %v1736_v8, %v1300_v19  ;;  %v1740_v25 = vpop.eup %1739  ;;  %v934_v27 = vmul.f32 1.442695, %v878_v23 }
 0x2fc   :  { %v973_v30 = vadd.f32 1.0, %v1740_v25 }
 0x2fd   :  { %v1305_v26 = vsel %vm1304_vm13, %v1736_v8, %v1301_v22  ;;  %1743 = vpow2.f32 %v934_v27 }
 0x2fe   :  { %v1742_v28 = vpop.eup %1741  ;;  %v1310_v29 = vsel %vm1307_vm14, %v1309_v24, %v1305_v26  ;;  %1745 = vrcp.f32 %v973_v30  ;;  %v836_v32 = vpop.f32.mrf.mxu3  ;;  %v1338_v48 = vand.u32 2147483648, %v973_v30  ;;  %v1336_v52 = vand.u32 2147483647, %v973_v30 }
 0x2ff   :  { %1484 = vst.msk [vmem:[%s2308_s9 + $0xa8] sm:$0xff] %vm1462_vm4, %v1310_v29  ;;  %v1313_v31 = vmul.f32 %v1742_v28, %v972_v15  ;;  %v837_v34 = vadd.f32 %v2235_v50, %v836_v32  ;;  %vm1318_vm15 = vweird.f32 %v1742_v28  ;;  %vm1332_vm5 = vweird.f32 %v973_v30 }
 0x300   :  { %vm1319_vm1 = vmor %vm1317_vm0, %vm1318_vm15  ;;  %v1339_v58 = vor.u32 1.1754944e-38, %v1338_v48  ;;  %vm1337_vm7 = vcmp.eq.f32.partialorder %v1336_v52, 8.507059e+37 }
 0x301   :  { %v1314_v33 = vsub.f32 1.0, %v1313_v31  ;;  %v879_v39 = vsub.f32 0.0, %v837_v34 }
 0x303   :  { %v1315_v36 = vmul.f32 %v1742_v28, %v1314_v33  ;;  %v1744_v40 = vpop.eup %1743  ;;  %v936_v42 = vmul.f32 1.442695, %v879_v39 }
 0x304   :  { %v1746_v4 = vpop.eup %1745  ;;  %v974_v43 = vadd.f32 1.0, %v1744_v40 }
 0x305   :  { %v1316_v41 = vadd.f32 %v1742_v28, %v1315_v36  ;;  %v1328_v45 = vmul.f32 %v1746_v4, %v973_v30  ;;  %1747 = vpow2.f32 %v936_v42  ;;  %vm1333_vm3 = vweird.f32 %v1746_v4 }
 0x306   :  { %1749 = vrcp.f32 %v974_v43  ;;  %v839_v46 = vpop.f32.mrf.mxu3  ;;  %vm1334_vm6 = vmor %vm1332_vm5, %vm1333_vm3  ;;  %v1353_v3 = vand.u32 2147483648, %v974_v43  ;;  %v1351_v6 = vand.u32 2147483647, %v974_v43  ;;  %vm1347_vm9 = vweird.f32 %v974_v43 }
 0x307   :  { %v1320_v44 = vsel %vm1319_vm1, %v1742_v28, %v1316_v41  ;;  %v1329_v47 = vsub.f32 1.0, %v1328_v45  ;;  %v840_v38 = vadd.f32 %v2235_v50, %v839_v46 }
 0x308   :  { %v1325_v49 = vsel %vm1322_vm2, %v1324_v0, %v1320_v44  ;;  %v1354_v12 = vor.u32 1.1754944e-38, %v1353_v3  ;;  %vm1352_vm11 = vcmp.eq.f32.partialorder %v1351_v6, 8.507059e+37 }
 0x309   :  { %1485 = vst.msk [vmem:[%s2308_s9 + $0xb0] sm:$0xff] %vm1462_vm4, %v1325_v49  ;;  %v1330_v51 = vmul.f32 %v1746_v4, %v1329_v47  ;;  %v880_v53 = vsub.f32 0.0, %v840_v38 }
 0x30b   :  { %v1748_v54 = vpop.eup %1747  ;;  %v1331_v55 = vadd.f32 %v1746_v4, %v1330_v51  ;;  %v938_v56 = vmul.f32 1.442695, %v880_v53 }
 0x30c   :  { %v1750_v57 = vpop.eup %1749  ;;  %v975_v59 = vadd.f32 1.0, %v1748_v54 }
 0x30d   :  { %v1335_v60 = vsel %vm1334_vm6, %v1746_v4, %v1331_v55  ;;  %v1343_v61 = vmul.f32 %v1750_v57, %v974_v43  ;;  %1751 = vpow2.f32 %v938_v56  ;;  %vm1348_vm8 = vweird.f32 %v1750_v57 }
 0x30e   :  { %v1340_v62 = vsel %vm1337_vm7, %v1339_v58, %v1335_v60  ;;  %1753 = vrcp.f32 %v975_v59  ;;  %v841_v63 = vpop.f32.mrf.mxu3  ;;  %vm1349_vm10 = vmor %vm1347_vm9, %vm1348_vm8  ;;  %v1368_v20 = vand.u32 2147483648, %v975_v59  ;;  %v1366_v22 = vand.u32 2147483647, %v975_v59 }
 0x30f   :  { %1486 = vst.msk [vmem:[%s2308_s9 + $0xb8] sm:$0xff] %vm1462_vm4, %v1340_v62  ;;  %v1344_v1 = vsub.f32 1.0, %v1343_v61  ;;  %v842_v2 = vadd.f32 %v2235_v50, %v841_v63  ;;  %vm1362_vm13 = vweird.f32 %v975_v59 }
 0x310   :  { %v1369_v28 = vor.u32 1.1754944e-38, %v1368_v20  ;;  %vm1367_vm15 = vcmp.eq.f32.partialorder %v1366_v22, 8.507059e+37 }
 0x311   :  { %v1345_v5 = vmul.f32 %v1750_v57, %v1344_v1  ;;  %v881_v7 = vsub.f32 0.0, %v842_v2 }
 0x313   :  { %v1752_v8 = vpop.eup %1751  ;;  %v1346_v9 = vadd.f32 %v1750_v57, %v1345_v5  ;;  %v940_v10 = vmul.f32 1.442695, %v881_v7 }
 0x314   :  { %v1754_v11 = vpop.eup %1753  ;;  %v976_v13 = vadd.f32 1.0, %v1752_v8 }
 0x315   :  { %v1350_v14 = vsel %vm1349_vm10, %v1750_v57, %v1346_v9  ;;  %v1358_v15 = vmul.f32 %v1754_v11, %v975_v59  ;;  %1755 = vpow2.f32 %v940_v10  ;;  %vm1363_vm12 = vweird.f32 %v1754_v11 }
 0x316   :  { %v1355_v16 = vsel %vm1352_vm11, %v1354_v12, %v1350_v14  ;;  %1757 = vrcp.f32 %v976_v13  ;;  %v844_v17 = vpop.f32.mrf.mxu3  ;;  %vm1364_vm14 = vmor %vm1362_vm13, %vm1363_vm12  ;;  %v1383_v36 = vand.u32 2147483648, %v976_v13  ;;  %v1381_v39 = vand.u32 2147483647, %v976_v13 }
 0x317   :  { %1487 = vst.msk [vmem:[%s2308_s9 + $0xc0] sm:$0xff] %vm1462_vm4, %v1355_v16  ;;  %v1359_v18 = vsub.f32 1.0, %v1358_v15  ;;  %v845_v19 = vadd.f32 %v2235_v50, %v844_v17  ;;  %vm1377_vm1 = vweird.f32 %v976_v13 }
 0x318   :  { %v1384_v43 = vor.u32 1.1754944e-38, %v1383_v36  ;;  %vm1382_vm3 = vcmp.eq.f32.partialorder %v1381_v39, 8.507059e+37 }
 0x319   :  { %v1360_v21 = vmul.f32 %v1754_v11, %v1359_v18  ;;  %v882_v23 = vsub.f32 0.0, %v845_v19 }
 0x31b   :  { %v1756_v24 = vpop.eup %1755  ;;  %v1361_v25 = vadd.f32 %v1754_v11, %v1360_v21  ;;  %v942_v26 = vmul.f32 1.442695, %v882_v23 }
 0x31c   :  { %v1758_v27 = vpop.eup %1757  ;;  %v977_v29 = vadd.f32 1.0, %v1756_v24 }
 0x31d   :  { %v1365_v30 = vsel %vm1364_vm14, %v1754_v11, %v1361_v25  ;;  %v1373_v31 = vmul.f32 %v1758_v27, %v976_v13  ;;  %1759 = vpow2.f32 %v942_v26  ;;  %vm1378_vm0 = vweird.f32 %v1758_v27 }
 0x31e   :  { %v1370_v32 = vsel %vm1367_vm15, %v1369_v28, %v1365_v30  ;;  %1761 = vrcp.f32 %v977_v29  ;;  %v846_v33 = vpop.f32.mrf.mxu3  ;;  %vm1379_vm2 = vmor %vm1377_vm1, %vm1378_vm0  ;;  %v1398_v51 = vand.u32 2147483648, %v977_v29  ;;  %v1396_v53 = vand.u32 2147483647, %v977_v29 }
 0x31f   :  { %1488 = vst.msk [vmem:[%s2308_s9 + $0xc8] sm:$0xff] %vm1462_vm4, %v1370_v32  ;;  %v1374_v34 = vsub.f32 1.0, %v1373_v31  ;;  %v847_v35 = vadd.f32 %v2235_v50, %v846_v33  ;;  %vm1392_vm6 = vweird.f32 %v977_v29 }
 0x320   :  { %v1399_v59 = vor.u32 1.1754944e-38, %v1398_v51  ;;  %vm1397_vm8 = vcmp.eq.f32.partialorder %v1396_v53, 8.507059e+37 }
 0x321   :  { %v1375_v37 = vmul.f32 %v1758_v27, %v1374_v34  ;;  %v883_v40 = vsub.f32 0.0, %v847_v35 }
 0x323   :  { %v1760_v41 = vpop.eup %1759  ;;  %v1376_v42 = vadd.f32 %v1758_v27, %v1375_v37  ;;  %v944_v4 = vmul.f32 1.442695, %v883_v40 }
 0x324   :  { %v1762_v0 = vpop.eup %1761  ;;  %v978_v44 = vadd.f32 1.0, %v1760_v41 }
 0x325   :  { %v1380_v45 = vsel %vm1379_vm2, %v1758_v27, %v1376_v42  ;;  %v1388_v49 = vmul.f32 %v1762_v0, %v977_v29  ;;  %1763 = vpow2.f32 %v944_v4  ;;  %vm1393_vm5 = vweird.f32 %v1762_v0 }
 0x326   :  { %v1385_v46 = vsel %vm1382_vm3, %v1384_v43, %v1380_v45  ;;  %1765 = vrcp.f32 %v978_v44  ;;  %v849_v47 = vpop.f32.mrf.mxu3  ;;  %vm1394_vm7 = vmor %vm1392_vm6, %vm1393_vm5  ;;  %v1413_v5 = vand.u32 2147483648, %v978_v44  ;;  %v1411_v7 = vand.u32 2147483647, %v978_v44 }
 0x327   :  { %1489 = vst.msk [vmem:[%s2308_s9 + $0xd0] sm:$0xff] %vm1462_vm4, %v1385_v46  ;;  %v1389_v38 = vsub.f32 1.0, %v1388_v49  ;;  %v850_v48 = vadd.f32 %v2235_v50, %v849_v47  ;;  %vm1407_vm10 = vweird.f32 %v978_v44 }
 0x328   :  { %v1414_v13 = vor.u32 1.1754944e-38, %v1413_v5  ;;  %vm1412_vm12 = vcmp.eq.f32.partialorder %v1411_v7, 8.507059e+37 }
 0x329   :  { %v1390_v52 = vmul.f32 %v1762_v0, %v1389_v38  ;;  %v884_v54 = vsub.f32 0.0, %v850_v48 }
 0x32b   :  { %v1764_v55 = vpop.eup %1763  ;;  %v1391_v56 = vadd.f32 %v1762_v0, %v1390_v52  ;;  %v946_v57 = vmul.f32 1.442695, %v884_v54 }
 0x32c   :  { %v1766_v58 = vpop.eup %1765  ;;  %v979_v60 = vadd.f32 1.0, %v1764_v55 }
 0x32d   :  { %v1395_v61 = vsel %vm1394_vm7, %v1762_v0, %v1391_v56  ;;  %v1403_v62 = vmul.f32 %v1766_v58, %v978_v44  ;;  %1767 = vpow2.f32 %v946_v57  ;;  %vm1408_vm9 = vweird.f32 %v1766_v58 }
 0x32e   :  { %v1400_v63 = vsel %vm1397_vm8, %v1399_v59, %v1395_v61  ;;  %1769 = vrcp.f32 %v979_v60  ;;  %v851_v1 = vpop.f32.mrf.mxu3  ;;  %vm1409_vm11 = vmor %vm1407_vm10, %vm1408_vm9  ;;  %v1428_v18 = vand.u32 2147483648, %v979_v60  ;;  %v1426_v20 = vand.u32 2147483647, %v979_v60 }
 0x32f   :  { %1490 = vst.msk [vmem:[%s2308_s9 + $0xd8] sm:$0xff] %vm1462_vm4, %v1400_v63  ;;  %v1404_v2 = vsub.f32 1.0, %v1403_v62  ;;  %v852_v3 = vadd.f32 %v2235_v50, %v851_v1  ;;  %vm1422_vm14 = vweird.f32 %v979_v60 }
 0x330   :  { %v1429_v24 = vor.u32 1.1754944e-38, %v1428_v18  ;;  %vm1427_vm0 = vcmp.eq.f32.partialorder %v1426_v20, 8.507059e+37 }
 0x331   :  { %v1405_v6 = vmul.f32 %v1766_v58, %v1404_v2  ;;  %v885_v8 = vsub.f32 0.0, %v852_v3 }
 0x333   :  { %v1768_v9 = vpop.eup %1767  ;;  %v1406_v10 = vadd.f32 %v1766_v58, %v1405_v6  ;;  %v948_v11 = vmul.f32 1.442695, %v885_v8 }
 0x334   :  { %v1770_v12 = vpop.eup %1769  ;;  %v980_v14 = vadd.f32 1.0, %v1768_v9 }
 0x335   :  { %v1410_v15 = vsel %vm1409_vm11, %v1766_v58, %v1406_v10  ;;  %v1418_v16 = vmul.f32 %v1770_v12, %v979_v60  ;;  %1771 = vpow2.f32 %v948_v11  ;;  %vm1423_vm13 = vweird.f32 %v1770_v12 }
 0x336   :  { %v1415_v17 = vsel %vm1412_vm12, %v1414_v13, %v1410_v15  ;;  %1773 = vrcp.f32 %v980_v14  ;;  %vm1424_vm15 = vmor %vm1422_vm14, %vm1423_vm13  ;;  %v1443_v30 = vand.u32 2147483648, %v980_v14  ;;  %v1441_v32 = vand.u32 2147483647, %v980_v14 }
 0x337   :  { %1491 = vst.msk [vmem:[%s2308_s9 + $0xe0] sm:$0xff] %vm1462_vm4, %v1415_v17  ;;  %v1419_v50 = vsub.f32 1.0, %v1418_v16  ;;  %vm1437_vm2 = vweird.f32 %v980_v14 }
 0x338   :  { %v1444_v35 = vor.u32 1.1754944e-38, %v1443_v30  ;;  %vm1442_vm5 = vcmp.eq.f32.partialorder %v1441_v32, 8.507059e+37 }
 0x339   :  { %v1420_v19 = vmul.f32 %v1770_v12, %v1419_v50 }
 0x33b   :  { %v1772_v21 = vpop.eup %1771  ;;  %v1421_v22 = vadd.f32 %v1770_v12, %v1420_v19 }
 0x33c   :  { %v1774_v23 = vpop.eup %1773  ;;  %v981_v25 = vadd.f32 1.0, %v1772_v21 }
 0x33d   :  { %v1425_v26 = vsel %vm1424_vm15, %v1770_v12, %v1421_v22  ;;  %v1433_v27 = vmul.f32 %v1774_v23, %v980_v14  ;;  %vm1438_vm1 = vweird.f32 %v1774_v23 }
 0x33e   :  { %v1430_v28 = vsel %vm1427_vm0, %v1429_v24, %v1425_v26  ;;  %1775 = vrcp.f32 %v981_v25  ;;  %vm1439_vm3 = vmor %vm1437_vm2, %vm1438_vm1  ;;  %v1458_v41 = vand.u32 2147483648, %v981_v25  ;;  %v1456_v4 = vand.u32 2147483647, %v981_v25 }
 0x33f   :  { %1492 = vst.msk [vmem:[%s2308_s9 + $0xe8] sm:$0xff] %vm1462_vm4, %v1430_v28  ;;  %v1434_v29 = vsub.f32 1.0, %v1433_v27  ;;  %vm1452_vm7 = vweird.f32 %v981_v25 }
 0x340   :  { %v1459_v43 = vor.u32 1.1754944e-38, %v1458_v41  ;;  %vm1457_vm9 = vcmp.eq.f32.partialorder %v1456_v4, 8.507059e+37 }
 0x341   :  { %v1435_v31 = vmul.f32 %v1774_v23, %v1434_v29 }
 0x343   :  { %v1436_v33 = vadd.f32 %v1774_v23, %v1435_v31 }
 0x344   :  { %v1776_v34 = vpop.eup %1775 }
 0x345   :  { %v1440_v36 = vsel %vm1439_vm3, %v1774_v23, %v1436_v33  ;;  %v1448_v37 = vmul.f32 %v1776_v34, %v981_v25  ;;  %vm1453_vm6 = vweird.f32 %v1776_v34 }
 0x346   :  { %v1445_v39 = vsel %vm1442_vm5, %v1444_v35, %v1440_v36  ;;  %vm1454_vm8 = vmor %vm1452_vm7, %vm1453_vm6 }
 0x347   :  { %1493 = vst.msk [vmem:[%s2308_s9 + $0xf0] sm:$0xff] %vm1462_vm4, %v1445_v39  ;;  %v1449_v40 = vsub.f32 1.0, %v1448_v37 }
 0x349   :  { %v1450_v42 = vmul.f32 %v1776_v34, %v1449_v40 }
 0x34b   :  { %v1451_v0 = vadd.f32 %v1776_v34, %v1450_v42 }
 0x34d   :  { %v1455_v44 = vsel %vm1454_vm8, %v1776_v34, %v1451_v0 }
 0x34e   :  { %v1460_v45 = vsel %vm1457_vm9, %v1459_v43, %v1455_v44 }
 0x34f   :  { %1494 = vst.msk [vmem:[%s2308_s9 + $0xf8] sm:$0xff] %vm1462_vm4, %v1460_v45 }

</bundles_post_ra>
